<compile_context>
chip_gen: v7x
topology: tpu7x:2x2x1
jax: 0.10.0
libtpu: 0.0.40
codegen_flags: <defaults>
</compile_context>

<pallas_src>
import functools

import jax
import jax.numpy as jnp
from jax.experimental import pallas as pl
from jax.experimental.pallas import tpu as pltpu

N_EMBD = 384
DROPOUT_P = 0.2


def _ffn_kernel(seed_ref, x_ref, w1_ref, b1_ref, w2_ref, b2_ref, o_ref,
                *, dropout_p, apply_dropout):
    # First linear (bf16 MXU operands, f32 accumulation) + bias + ReLU.
    h = jnp.dot(x_ref[...], w1_ref[...], preferred_element_type=jnp.float32)
    h = jnp.maximum(h + b1_ref[...], 0.0)

    # Second linear.
    y = jnp.dot(h.astype(jnp.bfloat16), w2_ref[...],
                preferred_element_type=jnp.float32)
    y = y + b2_ref[...]

    if apply_dropout:
        tm, cc = y.shape
        # Stateless counter-based hash PRNG: hash(global_element_index, seed).
        row = jax.lax.broadcasted_iota(jnp.int32, (tm, cc), 0)
        col = jax.lax.broadcasted_iota(jnp.int32, (tm, cc), 1)
        gid = (pl.program_id(0) * tm + row) * cc + col          # int32, wraps ok
        z = gid * jnp.int32(-1640531527) + seed_ref[0]          # 0x9E3779B9
        z = z ^ jax.lax.shift_right_logical(z, 16)
        z = z * jnp.int32(-2048144789)                          # 0x85EBCA6B
        z = z ^ jax.lax.shift_right_logical(z, 13)
        z = z * jnp.int32(-1028477387)                          # 0xC2B2AE35
        z = z ^ jax.lax.shift_right_logical(z, 16)
        u = z & jnp.int32(0x7FFFFFFF)                           # uniform in [0, 2^31)
        thresh = jnp.int32(int(round(dropout_p * (1 << 31))))   # integer threshold
        keep = u >= thresh
        scale = 1.0 / (1.0 - dropout_p)
        y = jnp.where(keep, y * jnp.float32(scale), jnp.float32(0.0))

    o_ref[...] = y.astype(o_ref.dtype)


def feed_forward(x, w1, b1, w2, b2, *, seed=0, training=True,
                 dropout_p=DROPOUT_P):
    """x: (B, T, C). Returns (B, T, C)."""
    B, T, C = x.shape
    H = w1.shape[1]
    M = B * T

    # Row tile: up to 512 rows, multiple of 16 (bf16 sublane packing).
    tm = min(512, M)
    tm = ((tm + 15) // 16) * 16
    M_pad = ((M + tm - 1) // tm) * tm

    x2 = x.reshape(M, C)
    if M_pad != M:
        x2 = jnp.pad(x2, ((0, M_pad - M), (0, 0)))

    # bf16 MXU operands (cast weights once here, not per tile).
    x2b = x2.astype(jnp.bfloat16)
    w1b = w1.astype(jnp.bfloat16)
    w2b = w2.astype(jnp.bfloat16)
    # Biases stay f32 and are added after f32 accumulation.
    b1r = b1.reshape(1, H).astype(jnp.float32)
    b2r = b2.reshape(1, C).astype(jnp.float32)
    seed_arr = jnp.array([seed], dtype=jnp.int32)

    kernel = functools.partial(_ffn_kernel, dropout_p=dropout_p,
                               apply_dropout=training)

    out = pl.pallas_call(
        kernel,
        out_shape=jax.ShapeDtypeStruct((M_pad, C), x.dtype),
        grid_spec=pltpu.PrefetchScalarGridSpec(
            num_scalar_prefetch=1,
            grid=(M_pad // tm,),
            in_specs=[
                pl.BlockSpec((tm, C), lambda i, seed: (i, 0)),   # x tile (bf16)
                pl.BlockSpec((C, H), lambda i, seed: (0, 0)),    # W1 (bf16, resident)
                pl.BlockSpec((1, H), lambda i, seed: (0, 0)),    # b1 (f32)
                pl.BlockSpec((H, C), lambda i, seed: (0, 0)),    # W2 (bf16, resident)
                pl.BlockSpec((1, C), lambda i, seed: (0, 0)),    # b2 (f32)
            ],
            out_specs=pl.BlockSpec((tm, C), lambda i, seed: (i, 0)),
        ),
        compiler_params=pltpu.CompilerParams(
            # Stateless per-element hash RNG -> tiles are order-independent,
            # so the grid axis can be sharded across v7x's two TensorCores.
            dimension_semantics=("parallel",),
            vmem_limit_bytes=32 * 1024 * 1024,
        ),
    )(seed_arr, x2b, w1b, b1r, w2b, b2r)

    if M_pad != M:
        out = out[:M]
    return out.reshape(B, T, C)


def init_params(key, n_embd=N_EMBD, dtype=jnp.float32):
    """Deterministic init mirroring nn.Linear's U(-1/sqrt(fan_in), 1/sqrt(fan_in))."""
    h = 4 * n_embd
    k1, k2, k3, k4 = jax.random.split(key, 4)
    lim1 = 1.0 / (n_embd ** 0.5)
    lim2 = 1.0 / (h ** 0.5)
    w1 = jax.random.uniform(k1, (n_embd, h), dtype, -lim1, lim1)
    b1 = jax.random.uniform(k2, (h,), dtype, -lim1, lim1)
    w2 = jax.random.uniform(k3, (h, n_embd), dtype, -lim2, lim2)
    b2 = jax.random.uniform(k4, (n_embd,), dtype, -lim2, lim2)
    return w1, b1, w2, b2


if __name__ == "__main__":
    key = jax.random.PRNGKey(0)
    kp, kx = jax.random.split(key)

    B, T, C = 2, 8, N_EMBD
    w1, b1, w2, b2 = init_params(kp, C)
    x = jax.random.normal(kx, (B, T, C), dtype=jnp.float32)

    # Training-mode forward (dropout active, deterministic seed).
    y = feed_forward(x, w1, b1, w2, b2, seed=0, training=True)
    y = jax.block_until_ready(y)
    assert y.shape == (B, T, C) and y.dtype == x.dtype

    # Dropout sanity: roughly dropout_p of the outputs should be zeroed.
    zero_frac = float(jnp.mean((y == 0.0).astype(jnp.float32)))
    assert 0.10 < zero_frac < 0.30, f"unexpected dropout fraction {zero_frac}"

    # Eval-mode forward vs. a pure-JAX reference with the same bf16 matmul
    # operands and f32 accumulation.
    y_eval = jax.block_until_ready(
        feed_forward(x, w1, b1, w2, b2, training=False))
    x2 = x.reshape(-1, C)
    h_ref = jnp.dot(x2.astype(jnp.bfloat16), w1.astype(jnp.bfloat16),
                    preferred_element_type=jnp.float32) + b1
    h_ref = jnp.maximum(h_ref, 0.0)
    ref = jnp.dot(h_ref.astype(jnp.bfloat16), w2.astype(jnp.bfloat16),
                  preferred_element_type=jnp.float32) + b2
    assert jnp.allclose(y_eval.reshape(-1, C), ref, atol=2e-2, rtol=2e-2)

    print("KERNEL_OK")
</pallas_src>

<mosaic_0001>
module attributes {stable_mosaic.version = 11 : i64} {
  func.func @_ffn_kernel(%arg0: i32, %arg1: memref<1xi32, #tpu.memory_space<smem>>, %arg2: memref<16x384xbf16, #tpu.memory_space<vmem>>, %arg3: memref<384x1536xbf16, #tpu.memory_space<vmem>>, %arg4: memref<1x1536xf32, #tpu.memory_space<vmem>>, %arg5: memref<1536x384xbf16, #tpu.memory_space<vmem>>, %arg6: memref<1x384xf32, #tpu.memory_space<vmem>>, %arg7: memref<16x384xf32, #tpu.memory_space<vmem>>) attributes {dimension_semantics = [#tpu.dimension_semantics<parallel>], iteration_bounds = array<i64: 1>, scalar_prefetch = 1 : i64, scratch_operands = 0 : i64, tpu.core_type = #tpu.core_type<tc>, window_params = [{transform_indices = @transform_0, window_bounds = array<i64: 16, 384>}, {pipeline_mode = #tpu.pipeline_mode<synchronous>, transform_indices = @transform_1, window_bounds = array<i64: 384, 1536>}, {pipeline_mode = #tpu.pipeline_mode<synchronous>, transform_indices = @transform_2, window_bounds = array<i64: 1, 1536>}, {pipeline_mode = #tpu.pipeline_mode<synchronous>, transform_indices = @transform_3, window_bounds = array<i64: 1536, 384>}, {pipeline_mode = #tpu.pipeline_mode<synchronous>, transform_indices = @transform_4, window_bounds = array<i64: 1, 384>}, {transform_indices = @transform_5, window_bounds = array<i64: 16, 384>}]} {
    %c0 = arith.constant 0 : index
    %c0_0 = arith.constant 0 : index
    %0 = vector.load %arg2[%c0, %c0_0] : memref<16x384xbf16, #tpu.memory_space<vmem>>, vector<16x384xbf16>
    %c0_1 = arith.constant 0 : index
    %c0_2 = arith.constant 0 : index
    %1 = vector.load %arg3[%c0_1, %c0_2] : memref<384x1536xbf16, #tpu.memory_space<vmem>>, vector<384x1536xbf16>
    %cst = arith.constant dense<0.000000e+00> : vector<16x1536xf32>
    %2 = tpu.matmul %0, %1, %cst {dimension_numbers = #tpu.dot_dimension_numbers<[1], [0], [0], [1], [0, 0, 1, 1], [], []>} : vector<16x384xbf16>, vector<384x1536xbf16>, vector<16x1536xf32> -> vector<16x1536xf32>
    %c0_3 = arith.constant 0 : index
    %c0_4 = arith.constant 0 : index
    %3 = vector.load %arg4[%c0_3, %c0_4] : memref<1x1536xf32, #tpu.memory_space<vmem>>, vector<1x1536xf32>
    %4 = vector.broadcast %3 : vector<1x1536xf32> to vector<16x1536xf32>
    %5 = arith.addf %2, %4 : vector<16x1536xf32>
    %cst_5 = arith.constant 0.000000e+00 : f32
    %6 = vector.broadcast %cst_5 : f32 to vector<16x1536xf32>
    %7 = arith.maximumf %5, %6 : vector<16x1536xf32>
    %8 = arith.truncf %7 : vector<16x1536xf32> to vector<16x1536xbf16>
    %c0_6 = arith.constant 0 : index
    %c0_7 = arith.constant 0 : index
    %9 = vector.load %arg5[%c0_6, %c0_7] : memref<1536x384xbf16, #tpu.memory_space<vmem>>, vector<1536x384xbf16>
    %cst_8 = arith.constant dense<0.000000e+00> : vector<16x384xf32>
    %10 = tpu.matmul %8, %9, %cst_8 {dimension_numbers = #tpu.dot_dimension_numbers<[1], [0], [0], [1], [0, 0, 1, 1], [], []>} : vector<16x1536xbf16>, vector<1536x384xbf16>, vector<16x384xf32> -> vector<16x384xf32>
    %c0_9 = arith.constant 0 : index
    %c0_10 = arith.constant 0 : index
    %11 = vector.load %arg6[%c0_9, %c0_10] : memref<1x384xf32, #tpu.memory_space<vmem>>, vector<1x384xf32>
    %12 = vector.broadcast %11 : vector<1x384xf32> to vector<16x384xf32>
    %13 = arith.addf %10, %12 : vector<16x384xf32>
    %14 = tpu.iota {dimensions = array<i32: 0>} : vector<16x384xi32>
    %15 = tpu.iota {dimensions = array<i32: 1>} : vector<16x384xi32>
    %c16_i32 = arith.constant 16 : i32
    %16 = arith.muli %arg0, %c16_i32 : i32
    %17 = vector.broadcast %16 : i32 to vector<16x384xi32>
    %18 = arith.addi %17, %14 : vector<16x384xi32>
    %c384_i32 = arith.constant 384 : i32
    %19 = vector.broadcast %c384_i32 : i32 to vector<16x384xi32>
    %20 = arith.muli %18, %19 : vector<16x384xi32>
    %21 = arith.addi %20, %15 : vector<16x384xi32>
    %c-1640531527_i32 = arith.constant -1640531527 : i32
    %22 = vector.broadcast %c-1640531527_i32 : i32 to vector<16x384xi32>
    %23 = arith.muli %21, %22 : vector<16x384xi32>
    %c0_11 = arith.constant 0 : index
    %24 = memref.load %arg1[%c0_11] : memref<1xi32, #tpu.memory_space<smem>>
    %25 = vector.broadcast %24 : i32 to vector<16x384xi32>
    %26 = arith.addi %23, %25 : vector<16x384xi32>
    %c16_i32_12 = arith.constant 16 : i32
    %27 = vector.broadcast %c16_i32_12 : i32 to vector<16x384xi32>
    %28 = arith.shrui %26, %27 : vector<16x384xi32>
    %29 = arith.xori %26, %28 : vector<16x384xi32>
    %c-2048144789_i32 = arith.constant -2048144789 : i32
    %30 = vector.broadcast %c-2048144789_i32 : i32 to vector<16x384xi32>
    %31 = arith.muli %29, %30 : vector<16x384xi32>
    %c13_i32 = arith.constant 13 : i32
    %32 = vector.broadcast %c13_i32 : i32 to vector<16x384xi32>
    %33 = arith.shrui %31, %32 : vector<16x384xi32>
    %34 = arith.xori %31, %33 : vector<16x384xi32>
    %c-1028477387_i32 = arith.constant -1028477387 : i32
    %35 = vector.broadcast %c-1028477387_i32 : i32 to vector<16x384xi32>
    %36 = arith.muli %34, %35 : vector<16x384xi32>
    %c16_i32_13 = arith.constant 16 : i32
    %37 = vector.broadcast %c16_i32_13 : i32 to vector<16x384xi32>
    %38 = arith.shrui %36, %37 : vector<16x384xi32>
    %39 = arith.xori %36, %38 : vector<16x384xi32>
    %c2147483647_i32 = arith.constant 2147483647 : i32
    %40 = vector.broadcast %c2147483647_i32 : i32 to vector<16x384xi32>
    %41 = arith.andi %39, %40 : vector<16x384xi32>
    %c429496730_i32 = arith.constant 429496730 : i32
    %42 = vector.broadcast %c429496730_i32 : i32 to vector<16x384xi32>
    %43 = arith.cmpi sge, %41, %42 : vector<16x384xi32>
    %cst_14 = arith.constant 1.250000e+00 : f32
    %44 = vector.broadcast %cst_14 : f32 to vector<16x384xf32>
    %45 = arith.mulf %13, %44 : vector<16x384xf32>
    %cst_15 = arith.constant 0.000000e+00 : f32
    %46 = vector.broadcast %cst_15 : f32 to vector<16x384xf32>
    %47 = arith.select %43, %45, %46 : vector<16x384xi1>, vector<16x384xf32>
    %c0_16 = arith.constant 0 : index
    %c0_17 = arith.constant 0 : index
    %48 = vector.load %arg7[%c0_16, %c0_17] : memref<16x384xf32, #tpu.memory_space<vmem>>, vector<16x384xf32>
    tpu.vector_store %arg7[%c0_16, %c0_17], %47 {strides = array<i32>} : memref<16x384xf32, #tpu.memory_space<vmem>>, vector<16x384xf32>,
    return
  }
  func.func @transform_0(%arg0: i32, %arg1: memref<1xi32, #tpu.memory_space<smem>>) -> (i32, i32) {
    %c0_i32 = arith.constant 0 : i32
    %c0_i32_0 = arith.constant 0 : i32
    return %arg0, %c0_i32 : i32, i32
  }
  func.func @transform_1(%arg0: i32, %arg1: memref<1xi32, #tpu.memory_space<smem>>) -> (i32, i32) {
    %c0_i32 = arith.constant 0 : i32
    %c0_i32_0 = arith.constant 0 : i32
    %c0_i32_1 = arith.constant 0 : i32
    return %c0_i32, %c0_i32_0 : i32, i32
  }
  func.func @transform_2(%arg0: i32, %arg1: memref<1xi32, #tpu.memory_space<smem>>) -> (i32, i32) {
    %c0_i32 = arith.constant 0 : i32
    %c0_i32_0 = arith.constant 0 : i32
    %c0_i32_1 = arith.constant 0 : i32
    return %c0_i32, %c0_i32_0 : i32, i32
  }
  func.func @transform_3(%arg0: i32, %arg1: memref<1xi32, #tpu.memory_space<smem>>) -> (i32, i32) {
    %c0_i32 = arith.constant 0 : i32
    %c0_i32_0 = arith.constant 0 : i32
    %c0_i32_1 = arith.constant 0 : i32
    return %c0_i32, %c0_i32_0 : i32, i32
  }
  func.func @transform_4(%arg0: i32, %arg1: memref<1xi32, #tpu.memory_space<smem>>) -> (i32, i32) {
    %c0_i32 = arith.constant 0 : i32
    %c0_i32_0 = arith.constant 0 : i32
    %c0_i32_1 = arith.constant 0 : i32
    return %c0_i32, %c0_i32_0 : i32, i32
  }
  func.func @transform_5(%arg0: i32, %arg1: memref<1xi32, #tpu.memory_space<smem>>) -> (i32, i32) {
    %c0_i32 = arith.constant 0 : i32
    %c0_i32_0 = arith.constant 0 : i32
    return %arg0, %c0_i32 : i32, i32
  }
}

</mosaic_0001>

<bundles_post_ra>
// kernel: tpu_custom_call.1
= control target key start
LH: loop header
LB: loop body
LE: loop exit
PB: predicated region body
PF: predicated region fallthrough
CT: control target
= control target key end

     0   :  { %12 = vsyncpa [#allocation5], 0  ;;  %s7030_s0 = inlined_call_operand.<no memory space> [shape: s32[1], index: 0, kind: input, shape index: {}]   ;;  %s7031_s1 = inlined_call_operand.hbm [shape: bf16[16,384], index: 1, kind: input, shape index: {}]   ;;  %s7032_s2 = inlined_call_operand.hbm [shape: bf16[384,1536], index: 2, kind: input, shape index: {}]   ;;  %s7033_s3 = inlined_call_operand.hbm [shape: f32[1,1536], index: 3, kind: input, shape index: {}]   ;;  %s7034_s4 = inlined_call_operand.hbm [shape: bf16[1536,384], index: 4, kind: input, shape index: {}]   ;;  %s7035_s5 = inlined_call_operand.hbm [shape: f32[1,384], index: 5, kind: input, shape index: {}]   ;;  %s7036_s6 = inlined_call_operand.hbm [shape: f32[16,384], index: 6, kind: output, shape index: {}]  }
   0x1   :  { %13 = vsyncpa [#allocation8], 0 }
   0x2   :  { %14 = vsyncpa [#allocation11], 0 }
   0x3   :  { %15 = vsyncpa [#allocation6], 0  ;;  %s6783_s21 = smov [#allocation7]   ;;  %s6643_s25 = scalar_lea.hbm %s7032_s2, 36864 }
   0x4   :  { %s33_s22 = sshll.u32 %s6783_s21, 4  ;;  %p6644_p0 = scmp.ne.s32.totalorder %s7032_s2, %s6643_s25  ;;  %s34_s22 = int_to_ptr.vmem [resolvable:$true] %s33_s22 }
   0x5   :  { %p6647_p1 = scmp.lt.u32.totalorder %s6643_s25, %s7032_s2 }
   0x7   :  { %p6649_p2 = pnand %p6647_p1, %p6644_p0 }
   0x9   :  { %6652 = shalt.err (!%p6649_p2)
}
   0xa   :  { %s6653_s30 = scalar_lea.vmem %s34_s22, 36864  ;;  %p6658_p4 = scmp.lt.s32.totalorder %s34_s22, %s34_s22 }
   0xb   :  { %p6654_p3 = scmp.ne.s32.totalorder %s34_s22, %s6653_s30  ;;  %p6659_p5 = scmp.lt.s32.totalorder %s6653_s30, %s6653_s30 }
   0xd   :  { %p6660_p6 = por %p6659_p5, %p6658_p4 }
   0xf   :  { %p6661_p7 = pnand %p6660_p6, %p6654_p3 }
  0x11   :  { %6664 = shalt.err (!%p6661_p7)
}
  0x12   :  { %s6784_s7 = smov 768   ;;  %s6785_s8 = smov 48  }
  0x13   :  { %39 = dma.hbm_to_vmem [thread:$0]  %s7032_s2, 36864, %s34_s22, [#allocation8], %s6784_s7, %s6784_s7, %s6785_s8  }
  0x14   :  { %s6786_s11 = smov [#allocation10]   ;;  %s6787_s13 = smov [#allocation4]  }
  0x15   :  { %s55_s12 = sshll.u32 %s6786_s11, 4  ;;  %s21_s14 = sshll.u32 %s6787_s13, 4  ;;  %s56_s12 = int_to_ptr.vmem [resolvable:$true] %s55_s12  ;;  %s22_s14 = int_to_ptr.vmem [resolvable:$true] %s21_s14 }
  0x16   :  { %s6665_s17 = scalar_lea.hbm %s7034_s4, 36864 }
  0x17   :  { %p6666_p8 = scmp.ne.s32.totalorder %s7034_s4, %s6665_s17  ;;  %p6669_p9 = scmp.lt.u32.totalorder %s6665_s17, %s7034_s4 }
  0x19   :  { %p6671_p10 = pnand %p6669_p9, %p6666_p8 }
  0x1b   :  { %6674 = shalt.err (!%p6671_p10)
}
  0x1c   :  { %s6675_s2 = scalar_lea.vmem %s56_s12, 36864  ;;  %p6680_p12 = scmp.lt.s32.totalorder %s56_s12, %s56_s12 }
  0x1d   :  { %p6676_p11 = scmp.ne.s32.totalorder %s56_s12, %s6675_s2  ;;  %p6681_p13 = scmp.lt.s32.totalorder %s6675_s2, %s6675_s2 }
  0x1f   :  { %p6682_p0 = por %p6681_p13, %p6680_p12 }
  0x21   :  { %p6683_p1 = pnand %p6682_p0, %p6676_p11 }
  0x23   :  { %6686 = shalt.err (!%p6683_p1)
}
  0x24   :  { %s6788_s22 = smov 192   ;;  %s6789_s23 = smov 12  }
  0x25   :  { %61 = dma.hbm_to_vmem [thread:$0]  %s7034_s4, 36864, %s56_s12, [#allocation11], %s6788_s22, %s6788_s22, %s6789_s23  }
  0x26   :  { %s6687_s28 = scalar_lea.hbm %s7031_s1, 384 }
  0x27   :  { %p6688_p2 = scmp.ne.s32.totalorder %s7031_s1, %s6687_s28  ;;  %p6691_p3 = scmp.lt.u32.totalorder %s6687_s28, %s7031_s1 }
  0x29   :  { %p6693_p4 = pnand %p6691_p3, %p6688_p2 }
  0x2b   :  { %6696 = shalt.err (!%p6693_p4)
}
  0x2c   :  { %s6697_s9 = scalar_lea.vmem %s22_s14, 384  ;;  %p6702_p6 = scmp.lt.s32.totalorder %s22_s14, %s22_s14 }
  0x2d   :  { %p6698_p5 = scmp.ne.s32.totalorder %s22_s14, %s6697_s9  ;;  %p6703_p7 = scmp.lt.s32.totalorder %s6697_s9, %s6697_s9 }
  0x2f   :  { %p6704_p8 = por %p6703_p7, %p6702_p6 }
  0x31   :  { %p6705_p9 = pnand %p6704_p8, %p6698_p5 }
  0x33   :  { %6708 = shalt.err (!%p6705_p9)
}
  0x34   :  { %27 = dma.hbm_to_vmem [thread:$0]  %s7031_s1, 384, %s22_s14, [#allocation5], %s6788_s22, %s6788_s22, %s6789_s23  }
  0x35   :  { %s6790_s11 = smov [#allocation9]   ;;  %s6791_s13 = smov [#allocation12]  }
  0x36   :  { %s46_s12 = sshll.u32 %s6790_s11, 4  ;;  %s68_s15 = sshll.u32 %s6791_s13, 4  ;;  %s47_s12 = int_to_ptr.vmem [resolvable:$true] %s46_s12  ;;  %s69_s15 = int_to_ptr.vmem [resolvable:$true] %s68_s15 }
  0x37   :  { %s6709_s18 = scalar_lea.hbm %s7033_s3, 192 }
  0x38   :  { %p6710_p10 = scmp.ne.s32.totalorder %s7033_s3, %s6709_s18  ;;  %p6713_p11 = scmp.lt.u32.totalorder %s6709_s18, %s7033_s3 }
  0x3a   :  { %p6715_p12 = pnand %p6713_p11, %p6710_p10 }
  0x3c   :  { %6718 = shalt.err (!%p6715_p12)
}
  0x3d   :  { %s6719_s1 = scalar_lea.vmem %s47_s12, 192  ;;  %p6724_p0 = scmp.lt.s32.totalorder %s47_s12, %s47_s12 }
  0x3e   :  { %p6720_p13 = scmp.ne.s32.totalorder %s47_s12, %s6719_s1  ;;  %p6725_p1 = scmp.lt.s32.totalorder %s6719_s1, %s6719_s1 }
  0x40   :  { %p6726_p2 = por %p6725_p1, %p6724_p0 }
  0x42   :  { %p6727_p3 = pnand %p6726_p2, %p6720_p13 }
  0x44   :  { %6730 = shalt.err (!%p6727_p3)
}
  0x45   :  { %49 = dma.hbm_to_vmem [thread:$0]  %s7033_s3, 192, %s47_s12, [#allocation8]  }
  0x46   :  { %s6731_s25 = scalar_lea.hbm %s7035_s5, 48 }
  0x47   :  { %p6732_p4 = scmp.ne.s32.totalorder %s7035_s5, %s6731_s25  ;;  %p6735_p5 = scmp.lt.u32.totalorder %s6731_s25, %s7035_s5 }
  0x49   :  { %p6737_p6 = pnand %p6735_p5, %p6732_p4 }
  0x4b   :  { %6740 = shalt.err (!%p6737_p6)
}
  0x4c   :  { %s6741_s30 = scalar_lea.vmem %s69_s15, 48  ;;  %s6745_s7 = scalar_lea.vmem %s69_s15, 64 }
  0x4d   :  { %p6742_p7 = scmp.ne.s32.totalorder %s69_s15, %s6741_s30  ;;  %p6746_p8 = scmp.lt.s32.totalorder %s69_s15, %s69_s15 }
  0x4e   :  { %p6747_p9 = scmp.lt.s32.totalorder %s6745_s7, %s6741_s30 }
  0x50   :  { %p6748_p10 = por %p6747_p9, %p6746_p8 }
  0x52   :  { %p6749_p11 = pnand %p6748_p10, %p6742_p7 }
  0x54   :  { %6752 = shalt.err (!%p6749_p11)
}
  0x55   :  { %71 = dma.hbm_to_vmem [thread:$0]  %s7035_s5, 48, %s69_s15, [#allocation11]  }
  0x56   :  { %6775 = dma.done.wait [#allocation5], 384  }
  0x57   :  { %6776 = vsyncadd [#allocation5], 4294966912 }
  0x58   :  { %6777 = dma.done.wait [#allocation8], 37056  }
  0x59   :  { %6778 = vsyncadd [#allocation8], 4294930240 }
  0x5a   :  { %6779 = dma.done.wait [#allocation11], 36912  }
  0x5b   :  { %6780 = vsyncadd [#allocation11], 4294930384  ;;  %v5819_v0 = vld [vmem:[#allocation7 + $0x4] ss:$48 sps:$4 sm:$0xff]   ;;  %v5821_v1 = vld [vmem:[#allocation7] ss:$48 sps:$4 sm:$0xff]  }
  0x5c   :  { %1900 = vmatprep.subr.bf16.mxu1 %v5819_v0  ;;  %v5822_v2 = vld [vmem:[#allocation7 + $0x64] ss:$48 sps:$4 sm:$0xff]   ;;  %v5824_v3 = vld [vmem:[#allocation7 + $0x60] ss:$48 sps:$4 sm:$0xff]   ;;  %v6891_v18 = vld [vmem:[#allocation4 + $0x4] ss:$12 sps:$4 sm:$0xff]  }
  0x5d   :  { %1901 = vmatpush1.bf16.msra.mxu1 %v5821_v1  ;;  %v5825_v4 = vld [vmem:[#allocation7 + $0xc4] ss:$48 sps:$4 sm:$0xff]   ;;  %v5827_v5 = vld [vmem:[#allocation7 + $0xc0] ss:$48 sps:$4 sm:$0xff]   ;;  %1932 = vmatprep.mubr.bf16.mxu1 %v6891_v18  ;;  %v6792_v63 = vmov 0  }
  0x5e   :  { %1902 = vmatprep.subr.bf16.mxu1 %v5822_v2  ;;  %v5828_v6 = vld [vmem:[#allocation7 + $0x124] ss:$48 sps:$4 sm:$0xff]   ;;  %v5830_v7 = vld [vmem:[#allocation7 + $0x120] ss:$48 sps:$4 sm:$0xff]   ;;  %2104 = vmatprep.mubr.bf16.mxu0 %v6891_v18 }
  0x5f   :  { %v5831_v8 = vld [vmem:[#allocation7 + $0x184] ss:$48 sps:$4 sm:$0xff]   ;;  %v5833_v9 = vld [vmem:[#allocation7 + $0x180] ss:$48 sps:$4 sm:$0xff]  }
  0x60   :  { %v5834_v10 = vld [vmem:[#allocation7 + $0x1e4] ss:$48 sps:$4 sm:$0xff]   ;;  %v5836_v11 = vld [vmem:[#allocation7 + $0x1e0] ss:$48 sps:$4 sm:$0xff]  }
  0x61   :  { %1903 = vmatpush1.bf16.msra.mxu1 %v5824_v3  ;;  %v5837_v12 = vld [vmem:[#allocation7 + $0x244] ss:$48 sps:$4 sm:$0xff]   ;;  %v5839_v14 = vld [vmem:[#allocation7 + $0x240] ss:$48 sps:$4 sm:$0xff]  }
  0x62   :  { %1904 = vmatprep.subr.bf16.mxu1 %v5825_v4  ;;  %v5864_v13 = vld [vmem:[#allocation7 + $0x14] ss:$48 sps:$4 sm:$0xff]   ;;  %v5868_v16 = vld [vmem:[#allocation7 + $0x10] ss:$48 sps:$4 sm:$0xff]  }
  0x63   :  { %v5840_v15 = vld [vmem:[#allocation7 + $0x2a4] ss:$48 sps:$4 sm:$0xff]   ;;  %2072 = vmatprep.subr.bf16.mxu0 %v5864_v13  ;;  %v5842_v19 = vld [vmem:[#allocation7 + $0x2a0] ss:$48 sps:$4 sm:$0xff]  }
  0x64   :  { %v5870_v17 = vld [vmem:[#allocation7 + $0x74] ss:$48 sps:$4 sm:$0xff]   ;;  %2073 = vmatpush1.bf16.msra.mxu0 %v5868_v16  ;;  %v5877_v20 = vld [vmem:[#allocation7 + $0x70] ss:$48 sps:$4 sm:$0xff]  }
  0x65   :  { %1905 = vmatpush1.bf16.msra.mxu1 %v5827_v5  ;;  %2074 = vmatprep.subr.bf16.mxu0 %v5870_v17  ;;  %v5879_v21 = vld [vmem:[#allocation7 + $0xd4] ss:$48 sps:$4 sm:$0xff]   ;;  %v5884_v23 = vld [vmem:[#allocation7 + $0xd0] ss:$48 sps:$4 sm:$0xff]  }
  0x66   :  { %1906 = vmatprep.subr.bf16.mxu1 %v5828_v6  ;;  %v5843_v22 = vld [vmem:[#allocation7 + $0x304] ss:$48 sps:$4 sm:$0xff]   ;;  %v5845_v25 = vld [vmem:[#allocation7 + $0x300] ss:$48 sps:$4 sm:$0xff]  }
  0x67   :  { %v5885_v24 = vld [vmem:[#allocation7 + $0x134] ss:$48 sps:$4 sm:$0xff]   ;;  %v5890_v27 = vld [vmem:[#allocation7 + $0x130] ss:$48 sps:$4 sm:$0xff]  }
  0x68   :  { %2075 = vmatpush1.bf16.msra.mxu0 %v5877_v20  ;;  %v5846_v26 = vld [vmem:[#allocation7 + $0x364] ss:$48 sps:$4 sm:$0xff]   ;;  %v5848_v29 = vld [vmem:[#allocation7 + $0x360] ss:$48 sps:$4 sm:$0xff]  }
  0x69   :  { %1907 = vmatpush1.bf16.msra.mxu1 %v5830_v7  ;;  %2076 = vmatprep.subr.bf16.mxu0 %v5879_v21  ;;  %v5891_v28 = vld [vmem:[#allocation7 + $0x194] ss:$48 sps:$4 sm:$0xff]   ;;  %v5896_v31 = vld [vmem:[#allocation7 + $0x190] ss:$48 sps:$4 sm:$0xff]  }
  0x6a   :  { %1908 = vmatprep.subr.bf16.mxu1 %v5831_v8  ;;  %v5849_v30 = vld [vmem:[#allocation7 + $0x3c4] ss:$48 sps:$4 sm:$0xff]   ;;  %v5851_v33 = vld [vmem:[#allocation7 + $0x3c0] ss:$48 sps:$4 sm:$0xff]  }
  0x6b   :  { %v5897_v32 = vld [vmem:[#allocation7 + $0x1f4] ss:$48 sps:$4 sm:$0xff]   ;;  %v5902_v35 = vld [vmem:[#allocation7 + $0x1f0] ss:$48 sps:$4 sm:$0xff]  }
  0x6c   :  { %2077 = vmatpush1.bf16.msra.mxu0 %v5884_v23  ;;  %v5852_v34 = vld [vmem:[#allocation7 + $0x424] ss:$48 sps:$4 sm:$0xff]   ;;  %v5854_v37 = vld [vmem:[#allocation7 + $0x420] ss:$48 sps:$4 sm:$0xff]  }
  0x6d   :  { %1909 = vmatpush1.bf16.msra.mxu1 %v5833_v9  ;;  %2078 = vmatprep.subr.bf16.mxu0 %v5885_v24  ;;  %v5903_v36 = vld [vmem:[#allocation7 + $0x254] ss:$48 sps:$4 sm:$0xff]   ;;  %v5908_v39 = vld [vmem:[#allocation7 + $0x250] ss:$48 sps:$4 sm:$0xff]  }
  0x6e   :  { %1910 = vmatprep.subr.bf16.mxu1 %v5834_v10  ;;  %v5855_v38 = vld [vmem:[#allocation7 + $0x484] ss:$48 sps:$4 sm:$0xff]   ;;  %v5857_v41 = vld [vmem:[#allocation7 + $0x480] ss:$48 sps:$4 sm:$0xff]  }
  0x6f   :  { %v5909_v40 = vld [vmem:[#allocation7 + $0x2b4] ss:$48 sps:$4 sm:$0xff]   ;;  %v5914_v43 = vld [vmem:[#allocation7 + $0x2b0] ss:$48 sps:$4 sm:$0xff]  }
  0x70   :  { %2079 = vmatpush1.bf16.msra.mxu0 %v5890_v27  ;;  %v5858_v42 = vld [vmem:[#allocation7 + $0x4e4] ss:$48 sps:$4 sm:$0xff]   ;;  %v5860_v45 = vld [vmem:[#allocation7 + $0x4e0] ss:$48 sps:$4 sm:$0xff]  }
  0x71   :  { %1911 = vmatpush1.bf16.msra.mxu1 %v5836_v11  ;;  %2080 = vmatprep.subr.bf16.mxu0 %v5891_v28  ;;  %v5915_v44 = vld [vmem:[#allocation7 + $0x314] ss:$48 sps:$4 sm:$0xff]   ;;  %v5920_v47 = vld [vmem:[#allocation7 + $0x310] ss:$48 sps:$4 sm:$0xff]  }
  0x72   :  { %1912 = vmatprep.subr.bf16.mxu1 %v5837_v12  ;;  %v5861_v46 = vld [vmem:[#allocation7 + $0x544] ss:$48 sps:$4 sm:$0xff]   ;;  %v5863_v49 = vld [vmem:[#allocation7 + $0x540] ss:$48 sps:$4 sm:$0xff]  }
  0x73   :  { %v5921_v48 = vld [vmem:[#allocation7 + $0x374] ss:$48 sps:$4 sm:$0xff]   ;;  %v5927_v51 = vld [vmem:[#allocation7 + $0x370] ss:$48 sps:$4 sm:$0xff]  }
  0x74   :  { %2081 = vmatpush1.bf16.msra.mxu0 %v5896_v31  ;;  %v5866_v50 = vld [vmem:[#allocation7 + $0x5a4] ss:$48 sps:$4 sm:$0xff]   ;;  %v5869_v53 = vld [vmem:[#allocation7 + $0x5a0] ss:$48 sps:$4 sm:$0xff]  }
  0x75   :  { %1913 = vmatpush1.bf16.msra.mxu1 %v5839_v14  ;;  %2082 = vmatprep.subr.bf16.mxu0 %v5897_v32  ;;  %v5928_v52 = vld [vmem:[#allocation7 + $0x3d4] ss:$48 sps:$4 sm:$0xff]   ;;  %v5933_v55 = vld [vmem:[#allocation7 + $0x3d0] ss:$48 sps:$4 sm:$0xff]  }
  0x76   :  { %1914 = vmatprep.subr.bf16.mxu1 %v5840_v15  ;;  %v5876_v54 = vld [vmem:[#allocation7 + $0x604] ss:$48 sps:$4 sm:$0xff]   ;;  %v5874_v58 = vld [vmem:[#allocation7 + $0x600] ss:$48 sps:$4 sm:$0xff]  }
  0x77   :  { %v5934_v56 = vld [vmem:[#allocation7 + $0x434] ss:$48 sps:$4 sm:$0xff]   ;;  %v5939_v60 = vld [vmem:[#allocation7 + $0x430] ss:$48 sps:$4 sm:$0xff]  }
  0x78   :  { %2083 = vmatpush1.bf16.msra.mxu0 %v5902_v35  ;;  %v6895_v57 = vld [vmem:[#allocation4] ss:$12 sps:$4 sm:$0xff]   ;;  %v5881_v62 = vld [vmem:[#allocation7 + $0x660] ss:$48 sps:$4 sm:$0xff]  }
  0x79   :  { %1915 = vmatpush1.bf16.msra.mxu1 %v5842_v19  ;;  %2084 = vmatprep.subr.bf16.mxu0 %v5903_v36  ;;  %v5883_v59 = vld [vmem:[#allocation7 + $0x664] ss:$48 sps:$4 sm:$0xff]   ;;  %v5945_v1 = vld [vmem:[#allocation7 + $0x490] ss:$48 sps:$4 sm:$0xff]  }
  0x7a   :  { %1916 = vmatprep.subr.bf16.mxu1 %v5843_v22  ;;  %v5940_v61 = vld [vmem:[#allocation7 + $0x494] ss:$48 sps:$4 sm:$0xff]   ;;  %v5887_v3 = vld [vmem:[#allocation7 + $0x6c0] ss:$48 sps:$4 sm:$0xff]  }
  0x7b   :  { %v5889_v0 = vld [vmem:[#allocation7 + $0x6c4] ss:$48 sps:$4 sm:$0xff]   ;;  %v5951_v5 = vld [vmem:[#allocation7 + $0x4f0] ss:$48 sps:$4 sm:$0xff]  }
  0x7c   :  { %2085 = vmatpush1.bf16.msra.mxu0 %v5908_v39  ;;  %v5946_v2 = vld [vmem:[#allocation7 + $0x4f4] ss:$48 sps:$4 sm:$0xff]   ;;  %v5893_v7 = vld [vmem:[#allocation7 + $0x720] ss:$48 sps:$4 sm:$0xff]  }
  0x7d   :  { %1917 = vmatpush1.bf16.msra.mxu1 %v5845_v25  ;;  %2086 = vmatprep.subr.bf16.mxu0 %v5909_v40  ;;  %v5895_v4 = vld [vmem:[#allocation7 + $0x724] ss:$48 sps:$4 sm:$0xff]   ;;  %v5957_v9 = vld [vmem:[#allocation7 + $0x550] ss:$48 sps:$4 sm:$0xff]   ;;  %v5926_v25 = vld [vmem:[#allocation7 + $0xc] ss:$48 sps:$4 sm:$0xff]  }
  0x7e   :  { %1918 = vmatprep.subr.bf16.mxu1 %v5846_v26  ;;  %v5952_v6 = vld [vmem:[#allocation7 + $0x554] ss:$48 sps:$4 sm:$0xff]   ;;  %v5899_v11 = vld [vmem:[#allocation7 + $0x780] ss:$48 sps:$4 sm:$0xff]  }
  0x7f   :  { %v5901_v8 = vld [vmem:[#allocation7 + $0x784] ss:$48 sps:$4 sm:$0xff]   ;;  %v5963_v13 = vld [vmem:[#allocation7 + $0x5b0] ss:$48 sps:$4 sm:$0xff]  }
  0x80   :  { %2087 = vmatpush1.bf16.msra.mxu0 %v5914_v43  ;;  %v5958_v10 = vld [vmem:[#allocation7 + $0x5b4] ss:$48 sps:$4 sm:$0xff]   ;;  %v5905_v15 = vld [vmem:[#allocation7 + $0x7e0] ss:$48 sps:$4 sm:$0xff]  }
  0x81   :  { %1919 = vmatpush1.bf16.msra.mxu1 %v5848_v29  ;;  %2088 = vmatprep.subr.bf16.mxu0 %v5915_v44  ;;  %v5907_v12 = vld [vmem:[#allocation7 + $0x7e4] ss:$48 sps:$4 sm:$0xff]   ;;  %v5964_v17 = vld [vmem:[#allocation7 + $0x610] ss:$48 sps:$4 sm:$0xff]   ;;  %v5924_v29 = vld [vmem:[#allocation7 + $0x8] ss:$48 sps:$4 sm:$0xff]  }
  0x82   :  { %1920 = vmatprep.subr.bf16.mxu1 %v5849_v30  ;;  %v5966_v14 = vld [vmem:[#allocation7 + $0x614] ss:$48 sps:$4 sm:$0xff]   ;;  %v5911_v20 = vld [vmem:[#allocation7 + $0x840] ss:$48 sps:$4 sm:$0xff]   ;;  %v5932_v30 = vld [vmem:[#allocation7 + $0x6c] ss:$48 sps:$4 sm:$0xff]  }
  0x83   :  { %v5913_v16 = vld [vmem:[#allocation7 + $0x844] ss:$48 sps:$4 sm:$0xff]   ;;  %v5970_v22 = vld [vmem:[#allocation7 + $0x670] ss:$48 sps:$4 sm:$0xff]  }
  0x84   :  { %2089 = vmatpush1.bf16.msra.mxu0 %v5920_v47  ;;  %v5972_v19 = vld [vmem:[#allocation7 + $0x674] ss:$48 sps:$4 sm:$0xff]   ;;  %v5917_v24 = vld [vmem:[#allocation7 + $0x8a0] ss:$48 sps:$4 sm:$0xff]  }
  0x85   :  { %1921 = vmatpush1.bf16.msra.mxu1 %v5851_v33  ;;  %2090 = vmatprep.subr.bf16.mxu0 %v5921_v48  ;;  %v5919_v21 = vld [vmem:[#allocation7 + $0x8a4] ss:$48 sps:$4 sm:$0xff]   ;;  %v5976_v26 = vld [vmem:[#allocation7 + $0x6d0] ss:$48 sps:$4 sm:$0xff]   ;;  %v5930_v33 = vld [vmem:[#allocation7 + $0x68] ss:$48 sps:$4 sm:$0xff]  }
  0x86   :  { %1922 = vmatprep.subr.bf16.mxu1 %v5852_v34  ;;  %v5978_v23 = vld [vmem:[#allocation7 + $0x6d4] ss:$48 sps:$4 sm:$0xff]   ;;  %v6901_v28 = vld [vmem:[#allocation4 + $0x8] ss:$12 sps:$4 sm:$0xff]  }
  0x87   :  { %v5984_v27 = vld [vmem:[#allocation7 + $0x734] ss:$48 sps:$4 sm:$0xff]   ;;  %v5982_v31 = vld [vmem:[#allocation7 + $0x730] ss:$48 sps:$4 sm:$0xff]   ;;  %v5938_v34 = vld [vmem:[#allocation7 + $0xcc] ss:$48 sps:$4 sm:$0xff]  }
  0x88   :  { %2091 = vmatpush1.bf16.msra.mxu0 %v5927_v51  ;;  %v5990_v32 = vld [vmem:[#allocation7 + $0x794] ss:$48 sps:$4 sm:$0xff]   ;;  %v5988_v35 = vld [vmem:[#allocation7 + $0x790] ss:$48 sps:$4 sm:$0xff]  }
  0x89   :  { %1923 = vmatpush1.bf16.msra.mxu1 %v5854_v37  ;;  %2092 = vmatprep.subr.bf16.mxu0 %v5928_v52  ;;  %v5996_v36 = vld [vmem:[#allocation7 + $0x7f4] ss:$48 sps:$4 sm:$0xff]   ;;  %v5936_v37 = vld [vmem:[#allocation7 + $0xc8] ss:$48 sps:$4 sm:$0xff]   ;;  %v5994_v39 = vld [vmem:[#allocation7 + $0x7f0] ss:$48 sps:$4 sm:$0xff]  }
  0x8a   :  { %1924 = vmatprep.subr.bf16.mxu1 %v5855_v38  ;;  %v5944_v38 = vld [vmem:[#allocation7 + $0x12c] ss:$48 sps:$4 sm:$0xff]   ;;  %v6002_v40 = vld [vmem:[#allocation7 + $0x854] ss:$48 sps:$4 sm:$0xff]   ;;  %v6000_v43 = vld [vmem:[#allocation7 + $0x850] ss:$48 sps:$4 sm:$0xff]  }
  0x8b   :  { %v6008_v44 = vld [vmem:[#allocation7 + $0x8b4] ss:$48 sps:$4 sm:$0xff]   ;;  %v6006_v47 = vld [vmem:[#allocation7 + $0x8b0] ss:$48 sps:$4 sm:$0xff]  }
  0x8c   :  { %2093 = vmatpush1.bf16.msra.mxu0 %v5933_v55  ;;  %v6014_v48 = vld [vmem:[#allocation7 + $0x24] ss:$48 sps:$4 sm:$0xff]   ;;  %v6012_v51 = vld [vmem:[#allocation7 + $0x20] ss:$48 sps:$4 sm:$0xff]  }
  0x8d   :  { %1925 = vmatpush1.bf16.msra.mxu1 %v5857_v41  ;;  %2094 = vmatprep.subr.bf16.mxu0 %v5934_v56  ;;  %v5942_v41 = vld [vmem:[#allocation7 + $0x128] ss:$48 sps:$4 sm:$0xff]   ;;  %v6020_v52 = vld [vmem:[#allocation7 + $0x84] ss:$48 sps:$4 sm:$0xff]   ;;  %v6018_v55 = vld [vmem:[#allocation7 + $0x80] ss:$48 sps:$4 sm:$0xff]  }
  0x8e   :  { %1926 = vmatprep.subr.bf16.mxu1 %v5858_v42  ;;  %v5950_v42 = vld [vmem:[#allocation7 + $0x18c] ss:$48 sps:$4 sm:$0xff]   ;;  %v6026_v56 = vld [vmem:[#allocation7 + $0xe4] ss:$48 sps:$4 sm:$0xff]  }
  0x90   :  { %2095 = vmatpush1.bf16.msra.mxu0 %v5939_v60  ;;  %v6024_v60 = vld [vmem:[#allocation7 + $0xe0] ss:$48 sps:$4 sm:$0xff]  }
  0x91   :  { %1927 = vmatpush1.bf16.msra.mxu1 %v5860_v45  ;;  %2096 = vmatprep.subr.bf16.mxu0 %v5940_v61  ;;  %v5948_v45 = vld [vmem:[#allocation7 + $0x188] ss:$48 sps:$4 sm:$0xff]   ;;  %v6032_v61 = vld [vmem:[#allocation7 + $0x144] ss:$48 sps:$4 sm:$0xff]  }
  0x92   :  { %1928 = vmatprep.subr.bf16.mxu1 %v5861_v46  ;;  %v5956_v46 = vld [vmem:[#allocation7 + $0x1ec] ss:$48 sps:$4 sm:$0xff]  }
  0x94   :  { %2097 = vmatpush1.bf16.msra.mxu0 %v5945_v1  ;;  %v6030_v1 = vld [vmem:[#allocation7 + $0x140] ss:$48 sps:$4 sm:$0xff]  }
  0x95   :  { %1929 = vmatpush1.bf16.msra.mxu1 %v5863_v49  ;;  %2098 = vmatprep.subr.bf16.mxu0 %v5946_v2  ;;  %v5954_v49 = vld [vmem:[#allocation7 + $0x1e8] ss:$48 sps:$4 sm:$0xff]   ;;  %v6038_v2 = vld [vmem:[#allocation7 + $0x1a4] ss:$48 sps:$4 sm:$0xff]  }
  0x96   :  { %1930 = vmatprep.subr.bf16.mxu1 %v5866_v50  ;;  %v5962_v50 = vld [vmem:[#allocation7 + $0x24c] ss:$48 sps:$4 sm:$0xff]  }
  0x98   :  { %2099 = vmatpush1.bf16.msra.mxu0 %v5951_v5  ;;  %v6044_v5 = vld [vmem:[#allocation7 + $0x204] ss:$48 sps:$4 sm:$0xff]  }
  0x99   :  { %1931 = vmatpush1.bf16.msra.mxu1 %v5869_v53  ;;  %2100 = vmatprep.subr.bf16.mxu0 %v5952_v6  ;;  %v5960_v53 = vld [vmem:[#allocation7 + $0x248] ss:$48 sps:$4 sm:$0xff]  }
  0x9a   :  { %1943 = vmatprep.subr.bf16.mxu1 %v5876_v54  ;;  %v5969_v54 = vld [vmem:[#allocation7 + $0x2ac] ss:$48 sps:$4 sm:$0xff]   ;;  %v5985_v6 = vld [vmem:[#allocation7 + $0x3c8] ss:$48 sps:$4 sm:$0xff]  }
  0x9c   :  { %1933 = vmatmul.mubr.bf16.vlgmr.msra.gmra.mrb[0].mxu1 %v6895_v57  ;;  %2101 = vmatpush1.bf16.msra.mxu0 %v5957_v9  ;;  %v6050_v9 = vld [vmem:[#allocation7 + $0x264] ss:$48 sps:$4 sm:$0xff]  }
  0x9d   :  { %1944 = vmatpush1.bf16.msra.mxu1 %v5874_v58  ;;  %1975 = vmatprep.mubr.bf16.mxu1 %v6792_v63  ;;  %v5967_v58 = vld [vmem:[#allocation7 + $0x2a8] ss:$48 sps:$4 sm:$0xff]  }
  0x9e   :  { %1945 = vmatprep.subr.bf16.mxu1 %v5883_v59  ;;  %2102 = vmatprep.subr.bf16.mxu0 %v5958_v10  ;;  %v5975_v59 = vld [vmem:[#allocation7 + $0x30c] ss:$48 sps:$4 sm:$0xff]   ;;  %v5991_v10 = vld [vmem:[#allocation7 + $0x428] ss:$48 sps:$4 sm:$0xff]  }
  0xa0   :  { %2103 = vmatpush1.bf16.msra.mxu0 %v5963_v13  ;;  %v6056_v13 = vld [vmem:[#allocation7 + $0x2c4] ss:$48 sps:$4 sm:$0xff]  }
  0xa1   :  { %1946 = vmatpush1.bf16.msra.mxu1 %v5881_v62  ;;  %2115 = vmatprep.subr.bf16.mxu0 %v5966_v14  ;;  %v5973_v62 = vld [vmem:[#allocation7 + $0x308] ss:$48 sps:$4 sm:$0xff]  }
  0xa2   :  { %1947 = vmatprep.subr.bf16.mxu1 %v5889_v0  ;;  %v5981_v0 = vld [vmem:[#allocation7 + $0x36c] ss:$48 sps:$4 sm:$0xff]   ;;  %v5997_v14 = vld [vmem:[#allocation7 + $0x488] ss:$48 sps:$4 sm:$0xff]  }
  0xa3   :  { %2105 = vmatmul.mubr.bf16.vlgmr.msra.gmra.mrb[0].mxu0 %v6895_v57 }
  0xa4   :  { %2116 = vmatpush1.bf16.msra.mxu0 %v5964_v17  ;;  %2147 = vmatprep.mubr.bf16.mxu0 %v6792_v63  ;;  %v6062_v17 = vld [vmem:[#allocation7 + $0x324] ss:$48 sps:$4 sm:$0xff]  }
  0xa5   :  { %1948 = vmatpush1.bf16.msra.mxu1 %v5887_v3  ;;  %2117 = vmatprep.subr.bf16.mxu0 %v5972_v19  ;;  %v5979_v3 = vld [vmem:[#allocation7 + $0x368] ss:$48 sps:$4 sm:$0xff]  }
  0xa6   :  { %1949 = vmatprep.subr.bf16.mxu1 %v5895_v4  ;;  %v6036_v4 = vld [vmem:[#allocation7 + $0x1a0] ss:$48 sps:$4 sm:$0xff]   ;;  %v6003_v19 = vld [vmem:[#allocation7 + $0x4e8] ss:$48 sps:$4 sm:$0xff]  }
  0xa8   :  { %2118 = vmatpush1.bf16.msra.mxu0 %v5970_v22  ;;  %v6068_v22 = vld [vmem:[#allocation7 + $0x384] ss:$48 sps:$4 sm:$0xff]  }
  0xa9   :  { %1950 = vmatpush1.bf16.msra.mxu1 %v5893_v7  ;;  %2119 = vmatprep.subr.bf16.mxu0 %v5978_v23  ;;  %v5993_v7 = vld [vmem:[#allocation7 + $0x42c] ss:$48 sps:$4 sm:$0xff]   ;;  %v6009_v23 = vld [vmem:[#allocation7 + $0x548] ss:$48 sps:$4 sm:$0xff]  }
  0xaa   :  { %1951 = vmatprep.subr.bf16.mxu1 %v5901_v8  ;;  %v6042_v8 = vld [vmem:[#allocation7 + $0x200] ss:$48 sps:$4 sm:$0xff]  }
  0xac   :  { %2120 = vmatpush1.bf16.msra.mxu0 %v5976_v26  ;;  %v6074_v26 = vld [vmem:[#allocation7 + $0x3e4] ss:$48 sps:$4 sm:$0xff]  }
  0xad   :  { %1952 = vmatpush1.bf16.msra.mxu1 %v5899_v11  ;;  %2121 = vmatprep.subr.bf16.mxu0 %v5984_v27  ;;  %v5999_v11 = vld [vmem:[#allocation7 + $0x48c] ss:$48 sps:$4 sm:$0xff]   ;;  %v6015_v27 = vld [vmem:[#allocation7 + $0x5a8] ss:$48 sps:$4 sm:$0xff]  }
  0xae   :  { %1953 = vmatprep.subr.bf16.mxu1 %v5907_v12  ;;  %v6048_v12 = vld [vmem:[#allocation7 + $0x260] ss:$48 sps:$4 sm:$0xff]  }
  0xb0   :  { %2122 = vmatpush1.bf16.msra.mxu0 %v5982_v31  ;;  %v6080_v31 = vld [vmem:[#allocation7 + $0x444] ss:$48 sps:$4 sm:$0xff]  }
  0xb1   :  { %1954 = vmatpush1.bf16.msra.mxu1 %v5905_v15  ;;  %2123 = vmatprep.subr.bf16.mxu0 %v5990_v32  ;;  %v6005_v15 = vld [vmem:[#allocation7 + $0x4ec] ss:$48 sps:$4 sm:$0xff]   ;;  %v6021_v32 = vld [vmem:[#allocation7 + $0x608] ss:$48 sps:$4 sm:$0xff]  }
  0xb2   :  { %1955 = vmatprep.subr.bf16.mxu1 %v5913_v16  ;;  %v6054_v16 = vld [vmem:[#allocation7 + $0x2c0] ss:$48 sps:$4 sm:$0xff]  }
  0xb4   :  { %2124 = vmatpush1.bf16.msra.mxu0 %v5988_v35  ;;  %v6086_v35 = vld [vmem:[#allocation7 + $0x4a4] ss:$48 sps:$4 sm:$0xff]  }
  0xb5   :  { %1956 = vmatpush1.bf16.msra.mxu1 %v5911_v20  ;;  %2125 = vmatprep.subr.bf16.mxu0 %v5996_v36  ;;  %v6011_v20 = vld [vmem:[#allocation7 + $0x54c] ss:$48 sps:$4 sm:$0xff]   ;;  %v6027_v36 = vld [vmem:[#allocation7 + $0x668] ss:$48 sps:$4 sm:$0xff]  }
  0xb6   :  { %1957 = vmatprep.subr.bf16.mxu1 %v5919_v21  ;;  %v6060_v21 = vld [vmem:[#allocation7 + $0x320] ss:$48 sps:$4 sm:$0xff]  }
  0xb8   :  { %2126 = vmatpush1.bf16.msra.mxu0 %v5994_v39  ;;  %v6092_v39 = vld [vmem:[#allocation7 + $0x504] ss:$48 sps:$4 sm:$0xff]  }
  0xb9   :  { %1958 = vmatpush1.bf16.msra.mxu1 %v5917_v24  ;;  %2127 = vmatprep.subr.bf16.mxu0 %v6002_v40  ;;  %v6017_v24 = vld [vmem:[#allocation7 + $0x5ac] ss:$48 sps:$4 sm:$0xff]   ;;  %v6033_v40 = vld [vmem:[#allocation7 + $0x6c8] ss:$48 sps:$4 sm:$0xff]  }
  0xba   :  { %1986 = vmatprep.subr.bf16.mxu1 %v5926_v25  ;;  %v6066_v25 = vld [vmem:[#allocation7 + $0x380] ss:$48 sps:$4 sm:$0xff]  }
  0xbc   :  { %1976 = vmatmul.mubr.bf16.vlgmr.msra.gmra.mrb[0].mxu1 %v6901_v28  ;;  %2128 = vmatpush1.bf16.msra.mxu0 %v6000_v43  ;;  %v6098_v43 = vld [vmem:[#allocation7 + $0x564] ss:$48 sps:$4 sm:$0xff]  }
  0xbd   :  { %1987 = vmatpush1.bf16.msra.mxu1 %v5924_v29  ;;  %2018 = vmatprep.mubr.bf16.mxu1 %v6891_v18  ;;  %v6023_v29 = vld [vmem:[#allocation7 + $0x60c] ss:$48 sps:$4 sm:$0xff]  }
  0xbe   :  { %1988 = vmatprep.subr.bf16.mxu1 %v5932_v30  ;;  %2129 = vmatprep.subr.bf16.mxu0 %v6008_v44  ;;  %v6072_v30 = vld [vmem:[#allocation7 + $0x3e0] ss:$48 sps:$4 sm:$0xff]   ;;  %v6039_v44 = vld [vmem:[#allocation7 + $0x728] ss:$48 sps:$4 sm:$0xff]  }
  0xc0   :  { %2130 = vmatpush1.bf16.msra.mxu0 %v6006_v47  ;;  %v6104_v47 = vld [vmem:[#allocation7 + $0x5c4] ss:$48 sps:$4 sm:$0xff]  }
  0xc1   :  { %1989 = vmatpush1.bf16.msra.mxu1 %v5930_v33  ;;  %2244 = vmatprep.subr.bf16.mxu0 %v6014_v48  ;;  %v6029_v33 = vld [vmem:[#allocation7 + $0x66c] ss:$48 sps:$4 sm:$0xff]   ;;  %v6045_v48 = vld [vmem:[#allocation7 + $0x788] ss:$48 sps:$4 sm:$0xff]  }
  0xc2   :  { %1990 = vmatprep.subr.bf16.mxu1 %v5938_v34  ;;  %v6078_v34 = vld [vmem:[#allocation7 + $0x440] ss:$48 sps:$4 sm:$0xff]  }
  0xc3   :  { %2148 = vmatmul.mubr.bf16.vlgmr.msra.gmra.mrb[0].mxu0 %v6901_v28 }
  0xc4   :  { %2245 = vmatpush1.bf16.msra.mxu0 %v6012_v51  ;;  %2276 = vmatprep.mubr.bf16.mxu0 %v6891_v18  ;;  %v5987_v18 = vld [vmem:[#allocation7 + $0x3cc] ss:$48 sps:$4 sm:$0xff]   ;;  %v6110_v51 = vld [vmem:[#allocation7 + $0x624] ss:$48 sps:$4 sm:$0xff]  }
  0xc5   :  { %1991 = vmatpush1.bf16.msra.mxu1 %v5936_v37  ;;  %2246 = vmatprep.subr.bf16.mxu0 %v6020_v52  ;;  %v6035_v37 = vld [vmem:[#allocation7 + $0x6cc] ss:$48 sps:$4 sm:$0xff]   ;;  %v6051_v52 = vld [vmem:[#allocation7 + $0x7e8] ss:$48 sps:$4 sm:$0xff]  }
  0xc6   :  { %1992 = vmatprep.subr.bf16.mxu1 %v5944_v38  ;;  %v6084_v38 = vld [vmem:[#allocation7 + $0x4a0] ss:$48 sps:$4 sm:$0xff]  }
  0xc8   :  { %2247 = vmatpush1.bf16.msra.mxu0 %v6018_v55  ;;  %v6116_v55 = vld [vmem:[#allocation7 + $0x684] ss:$48 sps:$4 sm:$0xff]  }
  0xc9   :  { %1993 = vmatpush1.bf16.msra.mxu1 %v5942_v41  ;;  %2248 = vmatprep.subr.bf16.mxu0 %v6026_v56  ;;  %v6041_v41 = vld [vmem:[#allocation7 + $0x72c] ss:$48 sps:$4 sm:$0xff]   ;;  %v6057_v56 = vld [vmem:[#allocation7 + $0x848] ss:$48 sps:$4 sm:$0xff]  }
  0xca   :  { %1994 = vmatprep.subr.bf16.mxu1 %v5950_v42  ;;  %v6090_v42 = vld [vmem:[#allocation7 + $0x500] ss:$48 sps:$4 sm:$0xff]  }
  0xcc   :  { %2249 = vmatpush1.bf16.msra.mxu0 %v6024_v60  ;;  %v6122_v60 = vld [vmem:[#allocation7 + $0x6e4] ss:$48 sps:$4 sm:$0xff]  }
  0xcd   :  { %1995 = vmatpush1.bf16.msra.mxu1 %v5948_v45  ;;  %2250 = vmatprep.subr.bf16.mxu0 %v6032_v61  ;;  %v6047_v45 = vld [vmem:[#allocation7 + $0x78c] ss:$48 sps:$4 sm:$0xff]   ;;  %v6063_v61 = vld [vmem:[#allocation7 + $0x8a8] ss:$48 sps:$4 sm:$0xff]  }
  0xce   :  { %1996 = vmatprep.subr.bf16.mxu1 %v5956_v46  ;;  %v6096_v46 = vld [vmem:[#allocation7 + $0x560] ss:$48 sps:$4 sm:$0xff]  }
  0xd0   :  { %2251 = vmatpush1.bf16.msra.mxu0 %v6030_v1  ;;  %v6128_v1 = vld [vmem:[#allocation7 + $0x744] ss:$48 sps:$4 sm:$0xff]  }
  0xd1   :  { %1997 = vmatpush1.bf16.msra.mxu1 %v5954_v49  ;;  %2252 = vmatprep.subr.bf16.mxu0 %v6038_v2  ;;  %v6053_v49 = vld [vmem:[#allocation7 + $0x7ec] ss:$48 sps:$4 sm:$0xff]   ;;  %v6069_v2 = vld [vmem:[#allocation7 + $0x18] ss:$48 sps:$4 sm:$0xff]  }
  0xd2   :  { %1998 = vmatprep.subr.bf16.mxu1 %v5962_v50  ;;  %v6102_v50 = vld [vmem:[#allocation7 + $0x5c0] ss:$48 sps:$4 sm:$0xff]  }
  0xd4   :  { %2253 = vmatpush1.bf16.msra.mxu0 %v6036_v4  ;;  %v6075_v4 = vld [vmem:[#allocation7 + $0x78] ss:$48 sps:$4 sm:$0xff]  }
  0xd5   :  { %1999 = vmatpush1.bf16.msra.mxu1 %v5960_v53  ;;  %2254 = vmatprep.subr.bf16.mxu0 %v6044_v5  ;;  %v6059_v53 = vld [vmem:[#allocation7 + $0x84c] ss:$48 sps:$4 sm:$0xff]  }
  0xd6   :  { %2000 = vmatprep.subr.bf16.mxu1 %v5969_v54  ;;  %v6108_v54 = vld [vmem:[#allocation7 + $0x620] ss:$48 sps:$4 sm:$0xff]   ;;  %v6083_v5 = vld [vmem:[#allocation7 + $0xdc] ss:$48 sps:$4 sm:$0xff]  }
  0xd8   :  { %2255 = vmatpush1.bf16.msra.mxu0 %v6042_v8  ;;  %v6081_v8 = vld [vmem:[#allocation7 + $0xd8] ss:$48 sps:$4 sm:$0xff]  }
  0xd9   :  { %2001 = vmatpush1.bf16.msra.mxu1 %v5967_v58  ;;  %2256 = vmatprep.subr.bf16.mxu0 %v6050_v9  ;;  %v6065_v58 = vld [vmem:[#allocation7 + $0x8ac] ss:$48 sps:$4 sm:$0xff]   ;;  %v6140_v9 = vld [vmem:[#allocation7 + $0x804] ss:$48 sps:$4 sm:$0xff]  }
  0xda   :  { %2002 = vmatprep.subr.bf16.mxu1 %v5975_v59  ;;  %v6114_v59 = vld [vmem:[#allocation7 + $0x680] ss:$48 sps:$4 sm:$0xff]  }
  0xdc   :  { %2257 = vmatpush1.bf16.msra.mxu0 %v6048_v12  ;;  %v6146_v12 = vld [vmem:[#allocation7 + $0x864] ss:$48 sps:$4 sm:$0xff]  }
  0xdd   :  { %2003 = vmatpush1.bf16.msra.mxu1 %v5973_v62  ;;  %2258 = vmatprep.subr.bf16.mxu0 %v6056_v13  ;;  %v6071_v62 = vld [vmem:[#allocation7 + $0x1c] ss:$48 sps:$4 sm:$0xff]   ;;  %v6087_v13 = vld [vmem:[#allocation7 + $0x138] ss:$48 sps:$4 sm:$0xff]  }
  0xde   :  { %2004 = vmatprep.subr.bf16.mxu1 %v5981_v0  ;;  %v6120_v0 = vld [vmem:[#allocation7 + $0x6e0] ss:$48 sps:$4 sm:$0xff]  }
  0xe0   :  { %2259 = vmatpush1.bf16.msra.mxu0 %v6054_v16  ;;  %v6152_v16 = vld [vmem:[#allocation7 + $0x8c4] ss:$48 sps:$4 sm:$0xff]  }
  0xe1   :  { %2005 = vmatpush1.bf16.msra.mxu1 %v5979_v3  ;;  %2260 = vmatprep.subr.bf16.mxu0 %v6062_v17  ;;  %v6077_v3 = vld [vmem:[#allocation7 + $0x7c] ss:$48 sps:$4 sm:$0xff]   ;;  %v6093_v17 = vld [vmem:[#allocation7 + $0x198] ss:$48 sps:$4 sm:$0xff]  }
  0xe2   :  { %2006 = vmatprep.subr.bf16.mxu1 %v5987_v18  ;;  %v6134_v18 = vld [vmem:[#allocation7 + $0x7a4] ss:$48 sps:$4 sm:$0xff]  }
  0xe4   :  { %2261 = vmatpush1.bf16.msra.mxu0 %v6060_v21  ;;  %v6161_v21 = vld [vmem:[#allocation10 + $0x4] ss:$12 sps:$4 sm:$0xff]  }
  0xe5   :  { %2007 = vmatpush1.bf16.msra.mxu1 %v5985_v6  ;;  %2262 = vmatprep.subr.bf16.mxu0 %v6068_v22  ;;  %v6912_v6 = vld [vmem:[#allocation4 + $0x4] ss:$12 sps:$4 sm:$0xff]  }
  0xe6   :  { %2008 = vmatprep.subr.bf16.mxu1 %v5993_v7  ;;  %v6132_v7 = vld [vmem:[#allocation7 + $0x7a0] ss:$48 sps:$4 sm:$0xff]   ;;  %v6099_v22 = vld [vmem:[#allocation7 + $0x1f8] ss:$48 sps:$4 sm:$0xff]  }
  0xe8   :  { %2263 = vmatpush1.bf16.msra.mxu0 %v6066_v25  ;;  %v6167_v25 = vld [vmem:[#allocation10 + $0x1c] ss:$12 sps:$4 sm:$0xff]  }
  0xe9   :  { %2009 = vmatpush1.bf16.msra.mxu1 %v5991_v10  ;;  %2264 = vmatprep.subr.bf16.mxu0 %v6074_v26  ;;  %v6089_v10 = vld [vmem:[#allocation7 + $0x13c] ss:$48 sps:$4 sm:$0xff]   ;;  %v6105_v26 = vld [vmem:[#allocation7 + $0x258] ss:$48 sps:$4 sm:$0xff]  }
  0xea   :  { %2010 = vmatprep.subr.bf16.mxu1 %v5999_v11  ;;  %v6138_v11 = vld [vmem:[#allocation7 + $0x800] ss:$48 sps:$4 sm:$0xff]  }
  0xec   :  { %2265 = vmatpush1.bf16.msra.mxu0 %v6072_v30  ;;  %v6173_v30 = vld [vmem:[#allocation10 + $0x34] ss:$12 sps:$4 sm:$0xff]  }
  0xed   :  { %2011 = vmatpush1.bf16.msra.mxu1 %v5997_v14  ;;  %2266 = vmatprep.subr.bf16.mxu0 %v6080_v31  ;;  %v6095_v14 = vld [vmem:[#allocation7 + $0x19c] ss:$48 sps:$4 sm:$0xff]   ;;  %v6111_v31 = vld [vmem:[#allocation7 + $0x2b8] ss:$48 sps:$4 sm:$0xff]  }
  0xee   :  { %2012 = vmatprep.subr.bf16.mxu1 %v6005_v15  ;;  %v6144_v15 = vld [vmem:[#allocation7 + $0x860] ss:$48 sps:$4 sm:$0xff]  }
  0xf0   :  { %2267 = vmatpush1.bf16.msra.mxu0 %v6078_v34  ;;  %v6179_v34 = vld [vmem:[#allocation10 + $0x4c] ss:$12 sps:$4 sm:$0xff]  }
  0xf1   :  { %2013 = vmatpush1.bf16.msra.mxu1 %v6003_v19  ;;  %2268 = vmatprep.subr.bf16.mxu0 %v6086_v35  ;;  %v6101_v19 = vld [vmem:[#allocation7 + $0x1fc] ss:$48 sps:$4 sm:$0xff]   ;;  %v6117_v35 = vld [vmem:[#allocation7 + $0x318] ss:$48 sps:$4 sm:$0xff]  }
  0xf2   :  { %2014 = vmatprep.subr.bf16.mxu1 %v6011_v20  ;;  %v6150_v20 = vld [vmem:[#allocation7 + $0x8c0] ss:$48 sps:$4 sm:$0xff]  }
  0xf4   :  { %2269 = vmatpush1.bf16.msra.mxu0 %v6084_v38  ;;  %v6123_v38 = vld [vmem:[#allocation7 + $0x378] ss:$48 sps:$4 sm:$0xff]  }
  0xf5   :  { %2015 = vmatpush1.bf16.msra.mxu1 %v6009_v23  ;;  %2270 = vmatprep.subr.bf16.mxu0 %v6092_v39  ;;  %v6107_v23 = vld [vmem:[#allocation7 + $0x25c] ss:$48 sps:$4 sm:$0xff]  }
  0xf6   :  { %2016 = vmatprep.subr.bf16.mxu1 %v6017_v24  ;;  %v6159_v24 = vld [vmem:[#allocation10] ss:$12 sps:$4 sm:$0xff]  }
  0xf7   :  { %v6131_v39 = vld [vmem:[#allocation7 + $0x3dc] ss:$48 sps:$4 sm:$0xff]  }
  0xf8   :  { %2271 = vmatpush1.bf16.msra.mxu0 %v6090_v42  ;;  %v6129_v42 = vld [vmem:[#allocation7 + $0x3d8] ss:$48 sps:$4 sm:$0xff]  }
  0xf9   :  { %2017 = vmatpush1.bf16.msra.mxu1 %v6015_v27  ;;  %2272 = vmatprep.subr.bf16.mxu0 %v6098_v43  ;;  %v6113_v27 = vld [vmem:[#allocation7 + $0x2bc] ss:$48 sps:$4 sm:$0xff]  }
  0xfa   :  { %2029 = vmatprep.subr.bf16.mxu1 %v6023_v29  ;;  %v6165_v29 = vld [vmem:[#allocation10 + $0x18] ss:$12 sps:$4 sm:$0xff]   ;;  %v6137_v43 = vld [vmem:[#allocation7 + $0x43c] ss:$48 sps:$4 sm:$0xff]  }
  0xfc   :  { %2019 = vmatmul.mubr.bf16.vlgmr.msra.gmra.mrb[4].mxu1 %v6895_v57  ;;  %2273 = vmatpush1.bf16.msra.mxu0 %v6096_v46  ;;  %v6135_v46 = vld [vmem:[#allocation7 + $0x438] ss:$48 sps:$4 sm:$0xff]  }
  0xfd   :  { %2030 = vmatpush1.bf16.msra.mxu1 %v6021_v32  ;;  %2061 = vmatprep.mubr.bf16.mxu1 %v6792_v63  ;;  %v6119_v32 = vld [vmem:[#allocation7 + $0x31c] ss:$48 sps:$4 sm:$0xff]  }
  0xfe   :  { %2031 = vmatprep.subr.bf16.mxu1 %v6029_v33  ;;  %2274 = vmatprep.subr.bf16.mxu0 %v6104_v47  ;;  %v6171_v33 = vld [vmem:[#allocation10 + $0x30] ss:$12 sps:$4 sm:$0xff]  }
  0xff   :  { %v6143_v47 = vld [vmem:[#allocation7 + $0x49c] ss:$48 sps:$4 sm:$0xff]  }
 0x100   :  { %2275 = vmatpush1.bf16.msra.mxu0 %v6102_v50  ;;  %v6141_v50 = vld [vmem:[#allocation7 + $0x498] ss:$48 sps:$4 sm:$0xff]  }
 0x101   :  { %2032 = vmatpush1.bf16.msra.mxu1 %v6027_v36  ;;  %2287 = vmatprep.subr.bf16.mxu0 %v6110_v51  ;;  %v6125_v36 = vld [vmem:[#allocation7 + $0x37c] ss:$48 sps:$4 sm:$0xff]  }
 0x102   :  { %2033 = vmatprep.subr.bf16.mxu1 %v6035_v37  ;;  %v6177_v37 = vld [vmem:[#allocation10 + $0x48] ss:$12 sps:$4 sm:$0xff]   ;;  %v6149_v51 = vld [vmem:[#allocation7 + $0x4fc] ss:$48 sps:$4 sm:$0xff]  }
 0x103   :  { %2277 = vmatmul.mubr.bf16.vlgmr.msra.gmra.mrb[4].mxu0 %v6895_v57  ;;  %v6126_v57 = vld [vmem:[#allocation7 + $0x740] ss:$48 sps:$4 sm:$0xff]  }
 0x104   :  { %2288 = vmatpush1.bf16.msra.mxu0 %v6108_v54  ;;  %2319 = vmatprep.mubr.bf16.mxu0 %v6792_v63  ;;  %v6147_v54 = vld [vmem:[#allocation7 + $0x4f8] ss:$48 sps:$4 sm:$0xff]  }
 0x105   :  { %2034 = vmatpush1.bf16.msra.mxu1 %v6033_v40  ;;  %2289 = vmatprep.subr.bf16.mxu0 %v6116_v55  ;;  %v6183_v40 = vld [vmem:[#allocation10 + $0x60] ss:$12 sps:$4 sm:$0xff]  }
 0x106   :  { %2035 = vmatprep.subr.bf16.mxu1 %v6041_v41  ;;  %v6191_v41 = vld [vmem:[#allocation10 + $0x7c] ss:$12 sps:$4 sm:$0xff]   ;;  %v6155_v55 = vld [vmem:[#allocation7 + $0x55c] ss:$48 sps:$4 sm:$0xff]  }
 0x108   :  { %2290 = vmatpush1.bf16.msra.mxu0 %v6114_v59  ;;  %v6153_v59 = vld [vmem:[#allocation7 + $0x558] ss:$48 sps:$4 sm:$0xff]  }
 0x109   :  { %2036 = vmatpush1.bf16.msra.mxu1 %v6039_v44  ;;  %2291 = vmatprep.subr.bf16.mxu0 %v6122_v60  ;;  %v6189_v44 = vld [vmem:[#allocation10 + $0x78] ss:$12 sps:$4 sm:$0xff]   ;;  %v6158_v60 = vld [vmem:[#allocation7 + $0x5bc] ss:$48 sps:$4 sm:$0xff]  }
 0x10a   :  { %2037 = vmatprep.subr.bf16.mxu1 %v6047_v45  ;;  %v6197_v45 = vld [vmem:[#allocation10 + $0x94] ss:$12 sps:$4 sm:$0xff]  }
 0x10c   :  { %2292 = vmatpush1.bf16.msra.mxu0 %v6120_v0  ;;  %v6156_v0 = vld [vmem:[#allocation7 + $0x5b8] ss:$48 sps:$4 sm:$0xff]  }
 0x10d   :  { %2038 = vmatpush1.bf16.msra.mxu1 %v6045_v48  ;;  %2293 = vmatprep.subr.bf16.mxu0 %v6128_v1  ;;  %v6195_v48 = vld [vmem:[#allocation10 + $0x90] ss:$12 sps:$4 sm:$0xff]  }
 0x10e   :  { %2039 = vmatprep.subr.bf16.mxu1 %v6053_v49  ;;  %v6203_v49 = vld [vmem:[#allocation10 + $0xac] ss:$12 sps:$4 sm:$0xff]   ;;  %v6164_v1 = vld [vmem:[#allocation7 + $0x61c] ss:$48 sps:$4 sm:$0xff]  }
 0x110   :  { %2294 = vmatpush1.bf16.msra.mxu0 %v6126_v57  ;;  %v6227_v57 = vld [vmem:[#allocation10 + $0x10c] ss:$12 sps:$4 sm:$0xff]  }
 0x111   :  { %2040 = vmatpush1.bf16.msra.mxu1 %v6051_v52  ;;  %2295 = vmatprep.subr.bf16.mxu0 %v6134_v18  ;;  %v6201_v52 = vld [vmem:[#allocation10 + $0xa8] ss:$12 sps:$4 sm:$0xff]   ;;  %v6170_v18 = vld [vmem:[#allocation7 + $0x67c] ss:$48 sps:$4 sm:$0xff]  }
 0x112   :  { %2041 = vmatprep.subr.bf16.mxu1 %v6059_v53  ;;  %v6209_v53 = vld [vmem:[#allocation10 + $0xc4] ss:$12 sps:$4 sm:$0xff]  }
 0x114   :  { %2296 = vmatpush1.bf16.msra.mxu0 %v6132_v7  ;;  %v6916_v7 = vld [vmem:[#allocation4] ss:$12 sps:$4 sm:$0xff]  }
 0x115   :  { %2042 = vmatpush1.bf16.msra.mxu1 %v6057_v56  ;;  %2297 = vmatprep.subr.bf16.mxu0 %v6140_v9  ;;  %v6207_v56 = vld [vmem:[#allocation10 + $0xc0] ss:$12 sps:$4 sm:$0xff]  }
 0x116   :  { %2043 = vmatprep.subr.bf16.mxu1 %v6065_v58  ;;  %v6215_v58 = vld [vmem:[#allocation10 + $0xdc] ss:$12 sps:$4 sm:$0xff]   ;;  %v6176_v9 = vld [vmem:[#allocation7 + $0x6dc] ss:$48 sps:$4 sm:$0xff]  }
 0x118   :  { %2298 = vmatpush1.bf16.msra.mxu0 %v6138_v11  ;;  %v6239_v11 = vld [vmem:[#allocation10 + $0x13c] ss:$12 sps:$4 sm:$0xff]  }
 0x119   :  { %2044 = vmatpush1.bf16.msra.mxu1 %v6063_v61  ;;  %2299 = vmatprep.subr.bf16.mxu0 %v6146_v12  ;;  %v6213_v61 = vld [vmem:[#allocation10 + $0xd8] ss:$12 sps:$4 sm:$0xff]   ;;  %v6174_v12 = vld [vmem:[#allocation7 + $0x6d8] ss:$48 sps:$4 sm:$0xff]  }
 0x11a   :  { %2158 = vmatprep.subr.bf16.mxu1 %v6071_v62  ;;  %v6221_v62 = vld [vmem:[#allocation10 + $0xf4] ss:$12 sps:$4 sm:$0xff]  }
 0x11c   :  { %2062 = vmatmul.mubr.bf16.vlgmr.msra.gmra.mrb[4].mxu1 %v6901_v28  ;;  %2300 = vmatpush1.bf16.msra.mxu0 %v6144_v15  ;;  %v6245_v15 = vld [vmem:[#allocation10 + $0x154] ss:$12 sps:$4 sm:$0xff]  }
 0x11d   :  { %2159 = vmatpush1.bf16.msra.mxu1 %v6069_v2  ;;  %2190 = vmatprep.mubr.bf16.mxu1 %v6912_v6  ;;  %v6219_v2 = vld [vmem:[#allocation10 + $0xf0] ss:$12 sps:$4 sm:$0xff]  }
 0x11e   :  { %2160 = vmatprep.subr.bf16.mxu1 %v6077_v3  ;;  %2301 = vmatprep.subr.bf16.mxu0 %v6152_v16  ;;  %v6162_v3 = vld [vmem:[#allocation7 + $0x618] ss:$48 sps:$4 sm:$0xff]  }
 0x11f   :  { %v6180_v16 = vld [vmem:[#allocation7 + $0x738] ss:$48 sps:$4 sm:$0xff]  }
 0x120   :  { %2302 = vmatpush1.bf16.msra.mxu0 %v6150_v20  ;;  %v6251_v20 = vld [vmem:[#allocation10 + $0x16c] ss:$12 sps:$4 sm:$0xff]  }
 0x121   :  { %2161 = vmatpush1.bf16.msra.mxu1 %v6075_v4  ;;  %4389 = vmatprep.subr.bf16.mxu0 %v6161_v21  ;;  %v6225_v4 = vld [vmem:[#allocation10 + $0x108] ss:$12 sps:$4 sm:$0xff]   ;;  %v6186_v21 = vld [vmem:[#allocation7 + $0x798] ss:$48 sps:$4 sm:$0xff]  }
 0x122   :  { %2162 = vmatprep.subr.bf16.mxu1 %v6083_v5  ;;  %v6233_v5 = vld [vmem:[#allocation10 + $0x124] ss:$12 sps:$4 sm:$0xff]  }
 0x123   :  { %2320 = vmatmul.mubr.bf16.vlgmr.msra.gmra.mrb[4].mxu0 %v6901_v28  ;;  %v6185_v28 = vld [vmem:[#allocation10 + $0x64] ss:$12 sps:$4 sm:$0xff]  }
 0x124   :  { %4390 = vmatpush1.bf16.msra.mxu0 %v6159_v24  ;;  %v6281_v24 = vld [vmem:[#allocation10 + $0x184] ss:$12 sps:$4 sm:$0xff]  }
 0x125   :  { %2163 = vmatpush1.bf16.msra.mxu1 %v6081_v8  ;;  %4391 = vmatprep.subr.bf16.mxu0 %v6167_v25  ;;  %v6168_v8 = vld [vmem:[#allocation7 + $0x678] ss:$48 sps:$4 sm:$0xff]  }
 0x126   :  { %2164 = vmatprep.subr.bf16.mxu1 %v6089_v10  ;;  %v6231_v10 = vld [vmem:[#allocation10 + $0x120] ss:$12 sps:$4 sm:$0xff]  }
 0x127   :  { %v6192_v25 = vld [vmem:[#allocation7 + $0x7f8] ss:$48 sps:$4 sm:$0xff]  }
 0x128   :  { %4392 = vmatpush1.bf16.msra.mxu0 %v6165_v29  ;;  %v6206_v29 = vld [vmem:[#allocation7 + $0x8bc] ss:$48 sps:$4 sm:$0xff]  }
 0x129   :  { %2165 = vmatpush1.bf16.msra.mxu1 %v6087_v13  ;;  %4393 = vmatprep.subr.bf16.mxu0 %v6173_v30  ;;  %v6182_v13 = vld [vmem:[#allocation7 + $0x73c] ss:$48 sps:$4 sm:$0xff]   ;;  %v6204_v30 = vld [vmem:[#allocation7 + $0x8b8] ss:$48 sps:$4 sm:$0xff]  }
 0x12a   :  { %2166 = vmatprep.subr.bf16.mxu1 %v6095_v14  ;;  %v6237_v14 = vld [vmem:[#allocation10 + $0x138] ss:$12 sps:$4 sm:$0xff]  }
 0x12c   :  { %4394 = vmatpush1.bf16.msra.mxu0 %v6171_v33  ;;  %v6218_v33 = vld [vmem:[#allocation7 + $0x8c] ss:$48 sps:$4 sm:$0xff]  }
 0x12d   :  { %2167 = vmatpush1.bf16.msra.mxu1 %v6093_v17  ;;  %4395 = vmatprep.subr.bf16.mxu0 %v6179_v34  ;;  %v6188_v17 = vld [vmem:[#allocation7 + $0x79c] ss:$48 sps:$4 sm:$0xff]  }
 0x12e   :  { %2168 = vmatprep.subr.bf16.mxu1 %v6101_v19  ;;  %v6243_v19 = vld [vmem:[#allocation10 + $0x150] ss:$12 sps:$4 sm:$0xff]  }
 0x12f   :  { %v6920_v34 = vld [vmem:[#allocation4 + $0x8] ss:$12 sps:$4 sm:$0xff]  }
 0x130   :  { %4396 = vmatpush1.bf16.msra.mxu0 %v6177_v37  ;;  %v6222_v37 = vld [vmem:[#allocation7 + $0xe8] ss:$48 sps:$4 sm:$0xff]  }
 0x131   :  { %2169 = vmatpush1.bf16.msra.mxu1 %v6099_v22  ;;  %4397 = vmatprep.subr.bf16.mxu0 %v6185_v28  ;;  %v6194_v22 = vld [vmem:[#allocation7 + $0x7fc] ss:$48 sps:$4 sm:$0xff]   ;;  %v384_v28 = vlaneseq }
 0x132   :  { %2170 = vmatprep.subr.bf16.mxu1 %v6107_v23  ;;  %v6249_v23 = vld [vmem:[#allocation10 + $0x168] ss:$12 sps:$4 sm:$0xff]  }
 0x134   :  { %4398 = vmatpush1.bf16.msra.mxu0 %v6183_v40  ;;  %v6925_v40 = vshrl.u32 %v384_v28, 7 }
 0x135   :  { %2171 = vmatpush1.bf16.msra.mxu1 %v6105_v26  ;;  %4399 = vmatprep.subr.bf16.mxu0 %v6191_v41  ;;  %v6200_v26 = vld [vmem:[#allocation7 + $0x85c] ss:$48 sps:$4 sm:$0xff]  }
 0x136   :  { %2172 = vmatprep.subr.bf16.mxu1 %v6113_v27  ;;  %v6198_v27 = vld [vmem:[#allocation7 + $0x858] ss:$48 sps:$4 sm:$0xff]   ;;  %v6236_v41 = vld [vmem:[#allocation7 + $0x1ac] ss:$48 sps:$4 sm:$0xff]  }
 0x138   :  { %4400 = vmatpush1.bf16.msra.mxu0 %v6189_v44  ;;  %v6930_v44 = vsub.s32 0, %v6925_v40 }
 0x139   :  { %2173 = vmatpush1.bf16.msra.mxu1 %v6111_v31  ;;  %4401 = vmatprep.subr.bf16.mxu0 %v6197_v45  ;;  %v6212_v31 = vld [vmem:[#allocation7 + $0x2c] ss:$48 sps:$4 sm:$0xff]   ;;  %v6933_v45 = vsub.s32 1, %v6925_v40 }
 0x13a   :  { %2174 = vmatprep.subr.bf16.mxu1 %v6119_v32  ;;  %v6210_v32 = vld [vmem:[#allocation7 + $0x28] ss:$48 sps:$4 sm:$0xff]  }
 0x13c   :  { %4402 = vmatpush1.bf16.msra.mxu0 %v6195_v48  ;;  %v6248_v48 = vld [vmem:[#allocation7 + $0x26c] ss:$48 sps:$4 sm:$0xff]  }
 0x13d   :  { %2175 = vmatpush1.bf16.msra.mxu1 %v6117_v35  ;;  %4403 = vmatprep.subr.bf16.mxu0 %v6203_v49  ;;  %v6216_v35 = vld [vmem:[#allocation7 + $0x88] ss:$48 sps:$4 sm:$0xff]  }
 0x13e   :  { %2176 = vmatprep.subr.bf16.mxu1 %v6125_v36  ;;  %v6224_v36 = vld [vmem:[#allocation7 + $0xec] ss:$48 sps:$4 sm:$0xff]  }
 0x140   :  { %4404 = vmatpush1.bf16.msra.mxu0 %v6201_v52 }
 0x141   :  { %2177 = vmatpush1.bf16.msra.mxu1 %v6123_v38  ;;  %4405 = vmatprep.subr.bf16.mxu0 %v6209_v53  ;;  %v6230_v38 = vld [vmem:[#allocation7 + $0x14c] ss:$48 sps:$4 sm:$0xff]   ;;  %v6246_v53 = vld [vmem:[#allocation7 + $0x268] ss:$48 sps:$4 sm:$0xff]  }
 0x142   :  { %2178 = vmatprep.subr.bf16.mxu1 %v6131_v39  ;;  %v6228_v39 = vld [vmem:[#allocation7 + $0x148] ss:$48 sps:$4 sm:$0xff]  }
 0x144   :  { %4406 = vmatpush1.bf16.msra.mxu0 %v6207_v56 }
 0x145   :  { %2179 = vmatpush1.bf16.msra.mxu1 %v6129_v42  ;;  %4407 = vmatprep.subr.bf16.mxu0 %v6215_v58  ;;  %v6234_v42 = vld [vmem:[#allocation7 + $0x1a8] ss:$48 sps:$4 sm:$0xff]  }
 0x146   :  { %2180 = vmatprep.subr.bf16.mxu1 %v6137_v43  ;;  %v6927_v43 = vld [vmem:[#allocation9] sm:$0xff] }
 0x147   :  { %v391_v49 = vrot.slane %v6927_v43, %v6933_v45 }
 0x148   :  { %4408 = vmatpush1.bf16.msra.mxu0 %v6213_v61  ;;  %v6252_v61 = vld [vmem:[#allocation7 + $0x2c8] ss:$48 sps:$4 sm:$0xff]  }
 0x149   :  { %2181 = vmatpush1.bf16.msra.mxu1 %v6135_v46  ;;  %4409 = vmatprep.subr.bf16.mxu0 %v6221_v62  ;;  %v6240_v46 = vld [vmem:[#allocation7 + $0x208] ss:$48 sps:$4 sm:$0xff]  }
 0x14a   :  { %2182 = vmatprep.subr.bf16.mxu1 %v6143_v47  ;;  %v387_v47 = vrot.slane %v6927_v43, %v6930_v44 }
 0x14c   :  { %4410 = vmatpush1.bf16.msra.mxu0 %v6219_v2  ;;  %v6257_v2 = vld [vmem:[#allocation7 + $0x32c] ss:$48 sps:$4 sm:$0xff]  }
 0x14d   :  { %2183 = vmatpush1.bf16.msra.mxu1 %v6141_v50  ;;  %4411 = vmatprep.subr.bf16.mxu0 %v6227_v57 }
 0x14e   :  { %2184 = vmatprep.subr.bf16.mxu1 %v6149_v51 }
 0x150   :  { %4412 = vmatpush1.bf16.msra.mxu0 %v6225_v4  ;;  %v6255_v4 = vld [vmem:[#allocation7 + $0x328] ss:$48 sps:$4 sm:$0xff]  }
 0x151   :  { %2185 = vmatpush1.bf16.msra.mxu1 %v6147_v54  ;;  %4413 = vmatprep.subr.bf16.mxu0 %v6233_v5  ;;  %v6254_v54 = vld [vmem:[#allocation7 + $0x2cc] ss:$48 sps:$4 sm:$0xff]  }
 0x152   :  { %2186 = vmatprep.subr.bf16.mxu1 %v6155_v55  ;;  %v6279_v5 = vld [vmem:[#allocation10 + $0x180] ss:$12 sps:$4 sm:$0xff]  }
 0x154   :  { %4414 = vmatpush1.bf16.msra.mxu0 %v6231_v10  ;;  %v6258_v10 = vld [vmem:[#allocation7 + $0x388] ss:$48 sps:$4 sm:$0xff]  }
 0x155   :  { %2187 = vmatpush1.bf16.msra.mxu1 %v6153_v59  ;;  %4415 = vmatprep.subr.bf16.mxu0 %v6239_v11  ;;  %v6285_v11 = vld [vmem:[#allocation10 + $0x198] ss:$12 sps:$4 sm:$0xff]  }
 0x156   :  { %2188 = vmatprep.subr.bf16.mxu1 %v6158_v60 }
 0x158   :  { %4416 = vmatpush1.bf16.msra.mxu0 %v6237_v14  ;;  %v402_v14 = vsub.s32 4, %v6925_v40 }
 0x159   :  { %2189 = vmatpush1.bf16.msra.mxu1 %v6156_v0  ;;  %4417 = vmatprep.subr.bf16.mxu0 %v6245_v15  ;;  %v406_v15 = vsub.s32 5, %v6925_v40 }
 0x15a   :  { %2201 = vmatprep.subr.bf16.mxu1 %v6164_v1 }
 0x15c   :  { %2191 = vmatmul.mubr.bf16.vlgmr.msra.gmra.mrb[8].mxu1 %v6916_v7  ;;  %4418 = vmatpush1.bf16.msra.mxu0 %v6243_v19  ;;  %v6266_v19 = vld [vmem:[#allocation7 + $0x44c] ss:$48 sps:$4 sm:$0xff]  }
 0x15d   :  { %2202 = vmatpush1.bf16.msra.mxu1 %v6162_v3  ;;  %2233 = vmatprep.mubr.bf16.mxu1 %v6792_v63 }
 0x15e   :  { %2203 = vmatprep.subr.bf16.mxu1 %v6170_v18  ;;  %4419 = vmatprep.subr.bf16.mxu0 %v6251_v20  ;;  %v6299_v20 = vld [vmem:[#allocation10 + $0x1cc] ss:$12 sps:$4 sm:$0xff]  }
 0x160   :  { %4420 = vmatpush1.bf16.msra.mxu0 %v6249_v23  ;;  %v6264_v23 = vld [vmem:[#allocation7 + $0x448] ss:$48 sps:$4 sm:$0xff]  }
 0x161   :  { %2204 = vmatpush1.bf16.msra.mxu1 %v6168_v8  ;;  %4432 = vmatprep.subr.bf16.mxu0 %v6281_v24  ;;  %v6260_v8 = vld [vmem:[#allocation7 + $0x38c] ss:$48 sps:$4 sm:$0xff]   ;;  %v6297_v24 = vld [vmem:[#allocation10 + $0x1c8] ss:$12 sps:$4 sm:$0xff]  }
 0x162   :  { %2205 = vmatprep.subr.bf16.mxu1 %v6176_v9  ;;  %v6287_v9 = vld [vmem:[#allocation10 + $0x19c] ss:$12 sps:$4 sm:$0xff]  }
 0x165   :  { %2206 = vmatpush1.bf16.msra.mxu1 %v6174_v12  ;;  %v6263_v12 = vld [vmem:[#allocation7 + $0x3ec] ss:$48 sps:$4 sm:$0xff]  }
 0x166   :  { %2207 = vmatprep.subr.bf16.mxu1 %v6182_v13  ;;  %v6293_v13 = vld [vmem:[#allocation10 + $0x1b4] ss:$12 sps:$4 sm:$0xff]  }
 0x169   :  { %2208 = vmatpush1.bf16.msra.mxu1 %v6180_v16  ;;  %v6261_v16 = vld [vmem:[#allocation7 + $0x3e8] ss:$48 sps:$4 sm:$0xff]  }
 0x16a   :  { %2209 = vmatprep.subr.bf16.mxu1 %v6188_v17  ;;  %v6291_v17 = vld [vmem:[#allocation10 + $0x1b0] ss:$12 sps:$4 sm:$0xff]  }
 0x16d   :  { %2210 = vmatpush1.bf16.msra.mxu1 %v6186_v21  ;;  %v403_v21 = vrot.slane %v6927_v43, %v402_v14  ;;  %v6300_v14 = vld [vmem:[#allocation7 + $0x748] ss:$48 sps:$4 sm:$0xff]  }
 0x16e   :  { %2211 = vmatprep.subr.bf16.mxu1 %v6194_v22  ;;  %v407_v22 = vrot.slane %v6927_v43, %v406_v15  ;;  %v6341_v15 = vld [vmem:[#allocation10 + $0x288] ss:$12 sps:$4 sm:$0xff]  }
 0x171   :  { %2212 = vmatpush1.bf16.msra.mxu1 %v6192_v25  ;;  %v6269_v25 = vld [vmem:[#allocation7 + $0x4ac] ss:$48 sps:$4 sm:$0xff]  }
 0x172   :  { %2213 = vmatprep.subr.bf16.mxu1 %v6200_v26  ;;  %v6305_v26 = vld [vmem:[#allocation10 + $0x1e4] ss:$12 sps:$4 sm:$0xff]  }
 0x175   :  { %2214 = vmatpush1.bf16.msra.mxu1 %v6198_v27 }
 0x176   :  { %2215 = vmatprep.subr.bf16.mxu1 %v6206_v29 }
 0x179   :  { %2216 = vmatpush1.bf16.msra.mxu1 %v6204_v30 }
 0x17a   :  { %2330 = vmatprep.subr.bf16.mxu1 %v6212_v31 }
 0x17c   :  { %2234 = vmatmul.mubr.bf16.vlgmr.msra.gmra.mrb[8].mxu1 %v6920_v34 }
 0x17d   :  { %2331 = vmatpush1.bf16.msra.mxu1 %v6210_v32  ;;  %2362 = vmatprep.mubr.bf16.mxu1 %v6912_v6  ;;  %v6242_v6 = vld [vmem:[#allocation7 + $0x20c] ss:$48 sps:$4 sm:$0xff]  }
 0x17e   :  { %2332 = vmatprep.subr.bf16.mxu1 %v6218_v33  ;;  %v6303_v33 = vld [vmem:[#allocation10 + $0x1e0] ss:$12 sps:$4 sm:$0xff]  }
 0x181   :  { %2333 = vmatpush1.bf16.msra.mxu1 %v6216_v35 }
 0x182   :  { %2334 = vmatprep.subr.bf16.mxu1 %v6224_v36 }
 0x185   :  { %2335 = vmatpush1.bf16.msra.mxu1 %v6222_v37 }
 0x186   :  { %2336 = vmatprep.subr.bf16.mxu1 %v6230_v38  ;;  %v6267_v38 = vld [vmem:[#allocation7 + $0x4a8] ss:$48 sps:$4 sm:$0xff]  }
 0x189   :  { %2337 = vmatpush1.bf16.msra.mxu1 %v6228_v39 }
 0x18a   :  { %2338 = vmatprep.subr.bf16.mxu1 %v6236_v41 }
 0x18d   :  { %2339 = vmatpush1.bf16.msra.mxu1 %v6234_v42  ;;  %v6311_v42 = vld [vmem:[#allocation10 + $0x1fc] ss:$12 sps:$4 sm:$0xff]  }
 0x18e   :  { %2340 = vmatprep.subr.bf16.mxu1 %v6242_v6  ;;  %v6272_v6 = vld [vmem:[#allocation7 + $0x50c] ss:$48 sps:$4 sm:$0xff]  }
 0x18f   :  { %v1977_v50 = vpop.f32.mrb[0].mxu1 }
 0x190   :  { %v5734_v51 = vadd.f32 %v1977_v50, %v387_v47  ;;  %v1979_v52 = vpop.f32.mrb[1].mxu1  ;;  %v6309_v50 = vld [vmem:[#allocation10 + $0x1f8] ss:$12 sps:$4 sm:$0xff]  }
 0x191   :  { %v5735_v55 = vadd.f32 %v1979_v52, %v391_v49  ;;  %v1981_v56 = vpop.f32.mrb[2].mxu1  ;;  %2341 = vmatpush1.bf16.msra.mxu1 %v6240_v46 }
 0x192   :  { %v5736_v58 = vadd.f32 %v1981_v56, %v387_v47  ;;  %v1983_v59 = vpop.f32.mrb[3].mxu1  ;;  %2342 = vmatprep.subr.bf16.mxu1 %v6248_v48  ;;  %v2416_v62 = vmax.f32 %v5734_v51, 0.0  ;;  %v6270_v48 = vld [vmem:[#allocation7 + $0x508] ss:$48 sps:$4 sm:$0xff]   ;;  %v6275_v51 = vld [vmem:[#allocation7 + $0x56c] ss:$48 sps:$4 sm:$0xff]  }
 0x193   :  { %v5737_v60 = vadd.f32 %v1983_v59, %v391_v49  ;;  %v2417_v0 = vmax.f32 %v5735_v55, 0.0  ;;  %v6315_v55 = vld [vmem:[#allocation10 + $0x210] ss:$12 sps:$4 sm:$0xff]  }
 0x194   :  { %v2428_v1 = vmax.f32 %v5736_v58, 0.0  ;;  %v6278_v56 = vld [vmem:[#allocation7 + $0x5cc] ss:$48 sps:$4 sm:$0xff]   ;;  %v6323_v58 = vld [vmem:[#allocation10 + $0x22c] ss:$12 sps:$4 sm:$0xff]  }
 0x195   :  { %v2429_v3 = vmax.f32 %v5737_v60, 0.0  ;;  %2343 = vmatpush1.bf16.msra.mxu1 %v6246_v53  ;;  %v6317_v53 = vld [vmem:[#allocation10 + $0x214] ss:$12 sps:$4 sm:$0xff]   ;;  %v6276_v59 = vld [vmem:[#allocation7 + $0x5c8] ss:$48 sps:$4 sm:$0xff]  }
 0x196   :  { %v6939_v57 = vpack.c.bf16 %v2428_v1, %v2416_v62  ;;  %2344 = vmatprep.subr.bf16.mxu1 %v6254_v54  ;;  %v2149_v27 = vpop.f32.mrb[0].mxu0  ;;  %v6273_v54 = vld [vmem:[#allocation7 + $0x568] ss:$48 sps:$4 sm:$0xff]   ;;  %v6321_v60 = vld [vmem:[#allocation10 + $0x228] ss:$12 sps:$4 sm:$0xff]  }
 0x197   :  { %v6941_v18 = vpack.c.bf16 %v2429_v3, %v2417_v0  ;;  %v5742_v29 = vadd.f32 %v2149_v27, %v403_v21  ;;  %v2151_v30 = vpop.f32.mrb[1].mxu0  ;;  %v6329_v62 = vld [vmem:[#allocation10 + $0x244] ss:$12 sps:$4 sm:$0xff]   ;;  %v6327_v0 = vld [vmem:[#allocation10 + $0x240] ss:$12 sps:$4 sm:$0xff]  }
 0x198   :  { %v5743_v31 = vadd.f32 %v2151_v30, %v407_v22  ;;  %v2153_v32 = vpop.f32.mrb[2].mxu0  ;;  %v6282_v1 = vld [vmem:[#allocation7 + $0x628] ss:$48 sps:$4 sm:$0xff]   ;;  %v6290_v3 = vld [vmem:[#allocation7 + $0x68c] ss:$48 sps:$4 sm:$0xff]  }
 0x199   :  { %2345 = vmatpush1.bf16.msra.mxu1 %v6252_v61  ;;  %4421 = vmatprep.mubr.bf16.mxu0 %v6941_v18  ;;  %v2420_v35 = vmax.f32 %v5742_v29, 0.0  ;;  %v5744_v36 = vadd.f32 %v2153_v32, %v403_v21  ;;  %v2155_v37 = vpop.f32.mrb[3].mxu0  ;;  %v6284_v61 = vld [vmem:[#allocation7 + $0x62c] ss:$48 sps:$4 sm:$0xff]   ;;  %v6312_v21 = vld [vmem:[#allocation7 + $0x808] ss:$48 sps:$4 sm:$0xff]  }
 0x19a   :  { %4422 = vmatmul.mubr.bf16.vlgmr.msra.gmra.mrb[8].mxu0 %v6939_v57  ;;  %2346 = vmatprep.subr.bf16.mxu1 %v6257_v2  ;;  %v2421_v39 = vmax.f32 %v5743_v31, 0.0  ;;  %v5745_v41 = vadd.f32 %v2155_v37, %v407_v22  ;;  %v6333_v2 = vld [vmem:[#allocation10 + $0x25c] ss:$12 sps:$4 sm:$0xff]   ;;  %v6351_v22 = vld [vmem:[#allocation10 + $0x2b8] ss:$12 sps:$4 sm:$0xff]  }
 0x19b   :  { %4433 = vmatpush1.bf16.msra.mxu0 %v6279_v5  ;;  %v2432_v46 = vmax.f32 %v5744_v36, 0.0  ;;  %v6288_v5 = vld [vmem:[#allocation7 + $0x688] ss:$48 sps:$4 sm:$0xff]   ;;  %v6326_v29 = vld [vmem:[#allocation7 + $0x8cc] ss:$48 sps:$4 sm:$0xff]  }
 0x19c   :  { %4434 = vmatprep.subr.bf16.mxu0 %v6287_v9  ;;  %v2433_v47 = vmax.f32 %v5745_v41, 0.0  ;;  %v6338_v9 = vld [vmem:[#allocation10 + $0x274] ss:$12 sps:$4 sm:$0xff]   ;;  %v6363_v27 = vld [vmem:[#allocation10 + $0x2ec] ss:$12 sps:$4 sm:$0xff]  }
 0x19d   :  { %2347 = vmatpush1.bf16.msra.mxu1 %v6255_v4  ;;  %v6949_v49 = vpack.c.bf16 %v2432_v46, %v2420_v35  ;;  %v6331_v4 = vld [vmem:[#allocation10 + $0x258] ss:$12 sps:$4 sm:$0xff]   ;;  %v6361_v30 = vld [vmem:[#allocation10 + $0x2e8] ss:$12 sps:$4 sm:$0xff]   ;;  %v6324_v31 = vld [vmem:[#allocation7 + $0x8c8] ss:$48 sps:$4 sm:$0xff]  }
 0x19e   :  { %2348 = vmatprep.subr.bf16.mxu1 %v6260_v8  ;;  %v6951_v52 = vpack.c.bf16 %v2433_v47, %v2421_v39  ;;  %v6296_v8 = vld [vmem:[#allocation7 + $0x6ec] ss:$48 sps:$4 sm:$0xff]   ;;  %v6334_v35 = vld [vmem:[#allocation10 + $0x8] ss:$12 sps:$4 sm:$0xff]   ;;  %v6344_v39 = vld [vmem:[#allocation10 + $0x38] ss:$12 sps:$4 sm:$0xff]  }
 0x19f   :  { %4435 = vmatpush1.bf16.msra.mxu0 %v6285_v11  ;;  %v6336_v11 = vld [vmem:[#allocation10 + $0x270] ss:$12 sps:$4 sm:$0xff]   ;;  %v6335_v36 = vld [vmem:[#allocation10 + $0xe0] ss:$12 sps:$4 sm:$0xff]   ;;  %v6958_v46 = vsub.s32 2, %v6925_v40 }
 0x1a0   :  { %4436 = vmatprep.subr.bf16.mxu0 %v6293_v13  ;;  %v6343_v13 = vld [vmem:[#allocation10 + $0x28c] ss:$12 sps:$4 sm:$0xff]   ;;  %v6368_v32 = vld [vmem:[#allocation10 + $0x304] ss:$12 sps:$4 sm:$0xff]   ;;  %v6354_v47 = vld [vmem:[#allocation10 + $0x68] ss:$12 sps:$4 sm:$0xff]  }
 0x1a1   :  { %2349 = vmatpush1.bf16.msra.mxu1 %v6258_v10  ;;  %v6294_v10 = vld [vmem:[#allocation7 + $0x6e8] ss:$48 sps:$4 sm:$0xff]  }
 0x1a2   :  { %2350 = vmatprep.subr.bf16.mxu1 %v6263_v12  ;;  %v6302_v12 = vld [vmem:[#allocation7 + $0x74c] ss:$48 sps:$4 sm:$0xff]  }
 0x1a3   :  { %4437 = vmatpush1.bf16.msra.mxu0 %v6291_v17  ;;  %v6306_v17 = vld [vmem:[#allocation7 + $0x7a8] ss:$48 sps:$4 sm:$0xff]  }
 0x1a4   :  { %4438 = vmatprep.subr.bf16.mxu0 %v6299_v20  ;;  %v6353_v20 = vld [vmem:[#allocation10 + $0x2bc] ss:$12 sps:$4 sm:$0xff]   ;;  %v6339_v37 = vld [vmem:[#allocation10 + $0x20] ss:$12 sps:$4 sm:$0xff]  }
 0x1a5   :  { %2351 = vmatpush1.bf16.msra.mxu1 %v6261_v16  ;;  %v6348_v16 = vld [vmem:[#allocation10 + $0x2a4] ss:$12 sps:$4 sm:$0xff]  }
 0x1a6   :  { %2352 = vmatprep.subr.bf16.mxu1 %v6266_v19  ;;  %v6314_v19 = vld [vmem:[#allocation7 + $0x80c] ss:$48 sps:$4 sm:$0xff]  }
 0x1a7   :  { %4439 = vmatpush1.bf16.msra.mxu0 %v6297_v24  ;;  %v6358_v24 = vld [vmem:[#allocation10 + $0x2d4] ss:$12 sps:$4 sm:$0xff]   ;;  %v6345_v41 = vld [vmem:[#allocation10 + $0x110] ss:$12 sps:$4 sm:$0xff]  }
 0x1a8   :  { %4440 = vmatprep.subr.bf16.mxu0 %v6305_v26  ;;  %v6318_v26 = vld [vmem:[#allocation7 + $0x868] ss:$48 sps:$4 sm:$0xff]  }
 0x1a9   :  { %2353 = vmatpush1.bf16.msra.mxu1 %v6264_v23  ;;  %v6320_v23 = vld [vmem:[#allocation7 + $0x86c] ss:$48 sps:$4 sm:$0xff]  }
 0x1aa   :  { %2354 = vmatprep.subr.bf16.mxu1 %v6269_v25  ;;  %v6356_v25 = vld [vmem:[#allocation10 + $0x2d0] ss:$12 sps:$4 sm:$0xff]  }
 0x1ab   :  { %4441 = vmatpush1.bf16.msra.mxu0 %v6303_v33  ;;  %v6330_v33 = vld [vmem:[#allocation10 + $0xc8] ss:$12 sps:$4 sm:$0xff]  }
 0x1ac   :  { %4442 = vmatprep.subr.bf16.mxu0 %v6311_v42  ;;  %v6349_v42 = vld [vmem:[#allocation10 + $0x50] ss:$12 sps:$4 sm:$0xff]  }
 0x1ad   :  { %2355 = vmatpush1.bf16.msra.mxu1 %v6267_v38  ;;  %v6340_v38 = vld [vmem:[#allocation10 + $0xf8] ss:$12 sps:$4 sm:$0xff]  }
 0x1ae   :  { %2356 = vmatprep.subr.bf16.mxu1 %v6272_v6  ;;  %v6350_v6 = vld [vmem:[#allocation10 + $0x128] ss:$12 sps:$4 sm:$0xff]  }
 0x1af   :  { %4443 = vmatpush1.bf16.msra.mxu0 %v6309_v50 }
 0x1b0   :  { %4444 = vmatprep.subr.bf16.mxu0 %v6317_v53  ;;  %v6360_v53 = vld [vmem:[#allocation10 + $0x158] ss:$12 sps:$4 sm:$0xff]  }
 0x1b1   :  { %2357 = vmatpush1.bf16.msra.mxu1 %v6270_v48  ;;  %v395_v48 = vrot.slane %v6927_v43, %v6958_v46 }
 0x1b2   :  { %2358 = vmatprep.subr.bf16.mxu1 %v6275_v51  ;;  %v6359_v51 = vld [vmem:[#allocation10 + $0x80] ss:$12 sps:$4 sm:$0xff]  }
 0x1b3   :  { %4445 = vmatpush1.bf16.msra.mxu0 %v6315_v55 }
 0x1b4   :  { %4446 = vmatprep.subr.bf16.mxu0 %v6323_v58 }
 0x1b5   :  { %2359 = vmatpush1.bf16.msra.mxu1 %v6273_v54 }
 0x1b6   :  { %2360 = vmatprep.subr.bf16.mxu1 %v6278_v56 }
 0x1b7   :  { %4447 = vmatpush1.bf16.msra.mxu0 %v6321_v60  ;;  %v6364_v60 = vld [vmem:[#allocation10 + $0x98] ss:$12 sps:$4 sm:$0xff]  }
 0x1b8   :  { %4448 = vmatprep.subr.bf16.mxu0 %v6329_v62 }
 0x1b9   :  { %2361 = vmatpush1.bf16.msra.mxu1 %v6276_v59 }
 0x1ba   :  { %2373 = vmatprep.subr.bf16.mxu1 %v6284_v61 }
 0x1bb   :  { %4449 = vmatpush1.bf16.msra.mxu0 %v6327_v0  ;;  %v6365_v0 = vld [vmem:[#allocation10 + $0x170] ss:$12 sps:$4 sm:$0xff]  }
 0x1bc   :  { %2363 = vmatmul.mubr.bf16.vlgmr.msra.gmra.mrb[12].mxu1 %v6916_v7  ;;  %4450 = vmatprep.subr.bf16.mxu0 %v6333_v2  ;;  %v6308_v7 = vld [vmem:[#allocation7 + $0x7ac] ss:$48 sps:$4 sm:$0xff]  }
 0x1bd   :  { %2374 = vmatpush1.bf16.msra.mxu1 %v6282_v1  ;;  %2405 = vmatprep.mubr.bf16.mxu1 %v6792_v63  ;;  %v6346_v63 = vld [vmem:[#allocation10 + $0x2a0] ss:$12 sps:$4 sm:$0xff]  }
 0x1be   :  { %2375 = vmatprep.subr.bf16.mxu1 %v6290_v3 }
 0x1bf   :  { %4451 = vmatpush1.bf16.msra.mxu0 %v6331_v4 }
 0x1c0   :  { %4452 = vmatprep.subr.bf16.mxu0 %v6338_v9  ;;  %v6370_v9 = vld [vmem:[#allocation10 + $0x248] ss:$12 sps:$4 sm:$0xff]  }
 0x1c1   :  { %2376 = vmatpush1.bf16.msra.mxu1 %v6288_v5 }
 0x1c2   :  { %2377 = vmatprep.subr.bf16.mxu1 %v6296_v8 }
 0x1c3   :  { %4453 = vmatpush1.bf16.msra.mxu0 %v6336_v11  ;;  %v6366_v11 = vld [vmem:[#allocation10 + $0x300] ss:$12 sps:$4 sm:$0xff]  }
 0x1c4   :  { %4454 = vmatprep.subr.bf16.mxu0 %v6343_v13  ;;  %v6374_v13 = vld [vmem:[#allocation10 + $0x188] ss:$12 sps:$4 sm:$0xff]  }
 0x1c5   :  { %2378 = vmatpush1.bf16.msra.mxu1 %v6294_v10 }
 0x1c6   :  { %2379 = vmatprep.subr.bf16.mxu1 %v6302_v12  ;;  %v6373_v12 = vld [vmem:[#allocation10 + $0x31c] ss:$12 sps:$4 sm:$0xff]  }
 0x1c7   :  { %4455 = vmatpush1.bf16.msra.mxu0 %v6341_v15  ;;  %v6371_v15 = vld [vmem:[#allocation10 + $0x318] ss:$12 sps:$4 sm:$0xff]  }
 0x1c8   :  { %4456 = vmatprep.subr.bf16.mxu0 %v6348_v16  ;;  %v6379_v16 = vld [vmem:[#allocation10 + $0x1a0] ss:$12 sps:$4 sm:$0xff]  }
 0x1c9   :  { %2380 = vmatpush1.bf16.msra.mxu1 %v6300_v14  ;;  %v6375_v14 = vld [vmem:[#allocation10 + $0x260] ss:$12 sps:$4 sm:$0xff]  }
 0x1ca   :  { %2381 = vmatprep.subr.bf16.mxu1 %v6308_v7  ;;  %v6378_v7 = vld [vmem:[#allocation10 + $0x334] ss:$12 sps:$4 sm:$0xff]  }
 0x1cb   :  { %4457 = vmatpush1.bf16.msra.mxu0 %v6346_v63  ;;  %v6971_v63 = vld [vmem:[#allocation9 + $0x8] sm:$0xf] }
 0x1cc   :  { %4458 = vmatprep.subr.bf16.mxu0 %v6353_v20  ;;  %v6383_v20 = vld [vmem:[#allocation10 + $0x34c] ss:$12 sps:$4 sm:$0xff]  }
 0x1cd   :  { %2382 = vmatpush1.bf16.msra.mxu1 %v6306_v17  ;;  %v6380_v17 = vld [vmem:[#allocation10 + $0x278] ss:$12 sps:$4 sm:$0xff]  }
 0x1ce   :  { %2383 = vmatprep.subr.bf16.mxu1 %v6314_v19  ;;  %v6376_v19 = vld [vmem:[#allocation10 + $0x330] ss:$12 sps:$4 sm:$0xff]  }
 0x1cf   :  { %4459 = vmatpush1.bf16.msra.mxu0 %v6351_v22  ;;  %v419_v22 = vrot.slane %v6971_v63, %v6930_v44 }
 0x1d0   :  { %4460 = vmatprep.subr.bf16.mxu0 %v6358_v24  ;;  %v6381_v24 = vld [vmem:[#allocation10 + $0x348] ss:$12 sps:$4 sm:$0xff]  }
 0x1d1   :  { %2384 = vmatpush1.bf16.msra.mxu1 %v6312_v21  ;;  %v6384_v21 = vld [vmem:[#allocation10 + $0x1b8] ss:$12 sps:$4 sm:$0xff]  }
 0x1d2   :  { %2385 = vmatprep.subr.bf16.mxu1 %v6320_v23  ;;  %v423_v23 = vrot.slane %v6971_v63, %v6933_v45 }
 0x1d3   :  { %4461 = vmatpush1.bf16.msra.mxu0 %v6356_v25  ;;  %v6388_v25 = vld [vmem:[#allocation10 + $0x364] ss:$12 sps:$4 sm:$0xff]  }
 0x1d4   :  { %4462 = vmatprep.subr.bf16.mxu0 %v6363_v27  ;;  %v6389_v27 = vld [vmem:[#allocation10 + $0x1d0] ss:$12 sps:$4 sm:$0xff]  }
 0x1d5   :  { %2386 = vmatpush1.bf16.msra.mxu1 %v6318_v26 }
 0x1d6   :  { %2387 = vmatprep.subr.bf16.mxu1 %v6326_v29 }
 0x1d7   :  { %4463 = vmatpush1.bf16.msra.mxu0 %v6361_v30 }
 0x1d8   :  { %4475 = vmatprep.subr.bf16.mxu0 %v6368_v32 }
 0x1d9   :  { %2388 = vmatpush1.bf16.msra.mxu1 %v6324_v31  ;;  %v6390_v31 = vld [vmem:[#allocation10 + $0x2a8] ss:$12 sps:$4 sm:$0xff]  }
 0x1da   :  { %5602 = vmatprep.subr.bf16.mxu1 %v6330_v33 }
 0x1dc   :  { %2406 = vmatmul.mubr.bf16.vlgmr.msra.gmra.mrb[12].mxu1 %v6920_v34  ;;  %v398_v34 = vsub.s32 3, %v6925_v40 }
 0x1dd   :  { %5603 = vmatpush3.bf16.msra.mxu1 %v6334_v35  ;;  %4679 = vmatprep.mubr.bf16.mxu1 %v6941_v18  ;;  %v6355_v18 = vld [vmem:[#allocation10 + $0x140] ss:$12 sps:$4 sm:$0xff]  }
 0x1de   :  { %5604 = vmatprep.subr.bf16.mxu1 %v6335_v36  ;;  %v399_v50 = vrot.slane %v6927_v43, %v398_v34  ;;  %v6369_v43 = vld [vmem:[#allocation10 + $0xb0] ss:$12 sps:$4 sm:$0xff]   ;;  %v6386_v35 = vld [vmem:[#allocation10 + $0x360] ss:$12 sps:$4 sm:$0xff]  }
 0x1e1   :  { %5605 = vmatpush3.bf16.msra.mxu1 %v6339_v37 }
 0x1e2   :  { %5606 = vmatprep.subr.bf16.mxu1 %v6340_v38 }
 0x1e5   :  { %5607 = vmatpush3.bf16.msra.mxu1 %v6344_v39  ;;  %v6393_v39 = vld [vmem:[#allocation10 + $0x37c] ss:$12 sps:$4 sm:$0xff]  }
 0x1e6   :  { %5608 = vmatprep.subr.bf16.mxu1 %v6345_v41 }
 0x1e9   :  { %5609 = vmatpush3.bf16.msra.mxu1 %v6349_v42 }
 0x1ea   :  { %5610 = vmatprep.subr.bf16.mxu1 %v6350_v6  ;;  %v6394_v6 = vld [vmem:[#allocation10 + $0x1e8] ss:$12 sps:$4 sm:$0xff]  }
 0x1ed   :  { %5611 = vmatpush3.bf16.msra.mxu1 %v6354_v47 }
 0x1ee   :  { %5612 = vmatprep.subr.bf16.mxu1 %v6355_v18  ;;  %v6395_v18 = vld [vmem:[#allocation10 + $0x2c0] ss:$12 sps:$4 sm:$0xff]  }
 0x1ef   :  { %v2063_v54 = vpop.f32.mrb[4].mxu1 }
 0x1f0   :  { %v5738_v55 = vadd.f32 %v2063_v54, %v395_v48  ;;  %v2065_v56 = vpop.f32.mrb[5].mxu1 }
 0x1f1   :  { %v5739_v58 = vadd.f32 %v2065_v56, %v399_v50  ;;  %v2067_v59 = vpop.f32.mrb[6].mxu1  ;;  %5613 = vmatpush3.bf16.msra.mxu1 %v6359_v51  ;;  %v6400_v56 = vld [vmem:[#allocation10 + $0x2d8] ss:$12 sps:$4 sm:$0xff]  }
 0x1f2   :  { %v5740_v61 = vadd.f32 %v2067_v59, %v395_v48  ;;  %v2069_v62 = vpop.f32.mrb[7].mxu1  ;;  %5614 = vmatprep.subr.bf16.mxu1 %v6360_v53  ;;  %v2418_v2 = vmax.f32 %v5738_v55, 0.0  ;;  %v6398_v53 = vld [vmem:[#allocation10 + $0x394] ss:$12 sps:$4 sm:$0xff]   ;;  %v6403_v59 = vld [vmem:[#allocation10 + $0x3ac] ss:$12 sps:$4 sm:$0xff]  }
 0x1f3   :  { %v5741_v1 = vadd.f32 %v2069_v62, %v399_v50  ;;  %v2419_v4 = vmax.f32 %v5739_v58, 0.0  ;;  %v6391_v50 = vld [vmem:[#allocation10 + $0x378] ss:$12 sps:$4 sm:$0xff]   ;;  %v6399_v55 = vld [vmem:[#allocation10 + $0x200] ss:$12 sps:$4 sm:$0xff]  }
 0x1f4   :  { %v2430_v3 = vmax.f32 %v5740_v61, 0.0  ;;  %v6396_v58 = vld [vmem:[#allocation10 + $0x390] ss:$12 sps:$4 sm:$0xff]   ;;  %v6401_v62 = vld [vmem:[#allocation10 + $0x3a8] ss:$12 sps:$4 sm:$0xff]  }
 0x1f5   :  { %v2431_v5 = vmax.f32 %v5741_v1, 0.0  ;;  %5615 = vmatpush3.bf16.msra.mxu1 %v6364_v60  ;;  %v6404_v60 = vld [vmem:[#allocation10 + $0x218] ss:$12 sps:$4 sm:$0xff]   ;;  %v6405_v61 = vld [vmem:[#allocation10 + $0x2f0] ss:$12 sps:$4 sm:$0xff]  }
 0x1f6   :  { %v6966_v8 = vpack.c.bf16 %v2430_v3, %v2418_v2  ;;  %5616 = vmatprep.subr.bf16.mxu1 %v6365_v0  ;;  %v2321_v26 = vpop.f32.mrb[4].mxu0  ;;  %v6408_v0 = vld [vmem:[#allocation10 + $0x3c4] ss:$12 sps:$4 sm:$0xff]   ;;  %v6410_v2 = vld [vmem:[#allocation10 + $0x3c8] ss:$12 sps:$4 sm:$0xff]  }
 0x1f7   :  { %v2443_v10 = vpack.c.bf16 %v2431_v5, %v2419_v4  ;;  %v5750_v29 = vadd.f32 %v2321_v26, %v419_v22  ;;  %v2323_v30 = vpop.f32.mrb[5].mxu0  ;;  %v6409_v1 = vld [vmem:[#allocation10 + $0x230] ss:$12 sps:$4 sm:$0xff]   ;;  %v6406_v3 = vld [vmem:[#allocation10 + $0x3c0] ss:$12 sps:$4 sm:$0xff]  }
 0x1f8   :  { %v5751_v32 = vadd.f32 %v2323_v30, %v423_v23  ;;  %v2325_v33 = vpop.f32.mrb[6].mxu0  ;;  %v6413_v4 = vld [vmem:[#allocation10 + $0x3dc] ss:$12 sps:$4 sm:$0xff]  }
 0x1f9   :  { %4464 = vmatprep.mubr.bf16.mxu0 %v2443_v10  ;;  %5617 = vmatpush3.bf16.msra.mxu1 %v6369_v43  ;;  %v2424_v36 = vmax.f32 %v5750_v29, 0.0  ;;  %v5752_v37 = vadd.f32 %v2325_v33, %v419_v22  ;;  %v2327_v38 = vpop.f32.mrb[7].mxu0  ;;  %v6414_v5 = vld [vmem:[#allocation10 + $0x308] ss:$12 sps:$4 sm:$0xff]   ;;  %v6415_v43 = vld [vmem:[#allocation10 + $0x3e0] ss:$12 sps:$4 sm:$0xff]  }
 0x1fa   :  { %4465 = vmatmul.mubr.bf16.vlgmr.msra.gmra.mrb[8].mxu0 %v6966_v8  ;;  %5624 = vmatprep.subr.bf16.mxu1 %v6370_v9  ;;  %v2425_v41 = vmax.f32 %v5751_v32, 0.0  ;;  %v5753_v42 = vadd.f32 %v2327_v38, %v423_v23  ;;  %v6411_v9 = vld [vmem:[#allocation10 + $0x3d8] ss:$12 sps:$4 sm:$0xff]   ;;  %v6435_v22 = vld [vmem:[#allocation10 + $0x440] ss:$12 sps:$4 sm:$0xff]  }
 0x1fb   :  { %4476 = vmatpush1.bf16.msra.mxu0 %v6366_v11  ;;  %4507 = vmatprep.mubr.bf16.mxu0 %v6951_v52  ;;  %v2436_v47 = vmax.f32 %v5752_v37, 0.0  ;;  %v6419_v11 = vld [vmem:[#allocation10 + $0x320] ss:$12 sps:$4 sm:$0xff]   ;;  %v6436_v26 = vld [vmem:[#allocation10 + $0x450] ss:$12 sps:$4 sm:$0xff]  }
 0x1fc   :  { %4680 = vmatmul.mubr.bf16.vlgmr.msra.gmra.mrb[16].mxu1 %v6939_v57  ;;  %4477 = vmatprep.subr.bf16.mxu0 %v6373_v12  ;;  %v6385_v57 = vld [vmem:[#allocation10 + $0x290] ss:$12 sps:$4 sm:$0xff]   ;;  %v2437_v48 = vmax.f32 %v5753_v42, 0.0  ;;  %v6420_v12 = vld [vmem:[#allocation10 + $0x3f8] ss:$12 sps:$4 sm:$0xff]  }
 0x1fd   :  { %5625 = vmatpush3.bf16.msra.mxu1 %v6374_v13  ;;  %4720 = vmatprep.mubr.bf16.mxu1 %v2443_v10  ;;  %v6977_v51 = vpack.c.bf16 %v2436_v47, %v2424_v36  ;;  %v6418_v10 = vld [vmem:[#allocation10 + $0x3f4] ss:$12 sps:$4 sm:$0xff]   ;;  %v6416_v13 = vld [vmem:[#allocation10 + $0x3f0] ss:$12 sps:$4 sm:$0xff]   ;;  %v6444_v29 = vld [vmem:[#allocation10 + $0x398] ss:$12 sps:$4 sm:$0xff]  }
 0x1fe   :  { %5626 = vmatprep.subr.bf16.mxu1 %v6375_v14  ;;  %v6979_v54 = vpack.c.bf16 %v2437_v48, %v2425_v41  ;;  %v6423_v14 = vld [vmem:[#allocation10 + $0x40c] ss:$12 sps:$4 sm:$0xff]   ;;  %v6438_v23 = vld [vmem:[#allocation10 + $0x454] ss:$12 sps:$4 sm:$0xff]   ;;  %v6445_v30 = vld [vmem:[#allocation10 + $0x470] ss:$12 sps:$4 sm:$0xff]  }
 0x1ff   :  { %4478 = vmatpush1.bf16.msra.mxu0 %v6371_v15  ;;  %v6424_v15 = vld [vmem:[#allocation10 + $0x338] ss:$12 sps:$4 sm:$0xff]   ;;  %v6449_v33 = vld [vmem:[#allocation10 + $0x3b0] ss:$12 sps:$4 sm:$0xff]   ;;  %v6446_v36 = vld [vmem:[#allocation10 + $0x480] ss:$12 sps:$4 sm:$0xff]  }
 0x200   :  { %4479 = vmatprep.subr.bf16.mxu0 %v6378_v7  ;;  %v6425_v7 = vld [vmem:[#allocation10 + $0x410] ss:$12 sps:$4 sm:$0xff]   ;;  %v6454_v38 = vld [vmem:[#allocation10 + $0x488] ss:$12 sps:$4 sm:$0xff]   ;;  %v6451_v41 = vld [vmem:[#allocation10 + $0x498] ss:$12 sps:$4 sm:$0xff]  }
 0x201   :  { %5627 = vmatpush3.bf16.msra.mxu1 %v6379_v16  ;;  %v6421_v16 = vld [vmem:[#allocation10 + $0x408] ss:$12 sps:$4 sm:$0xff]   ;;  %v6448_v32 = vld [vmem:[#allocation10 + $0x484] ss:$12 sps:$4 sm:$0xff]   ;;  %v6463_v48 = vld [vmem:[#allocation10 + $0x4cc] ss:$12 sps:$4 sm:$0xff]  }
 0x202   :  { %5628 = vmatprep.subr.bf16.mxu1 %v6380_v17  ;;  %v6429_v17 = vld [vmem:[#allocation10 + $0x350] ss:$12 sps:$4 sm:$0xff]   ;;  %v6458_v42 = vld [vmem:[#allocation10 + $0x4b4] ss:$12 sps:$4 sm:$0xff]   ;;  %v6460_v47 = vld [vmem:[#allocation10 + $0x578] ss:$12 sps:$4 sm:$0xff]  }
 0x203   :  { %4480 = vmatpush1.bf16.msra.mxu0 %v6376_v19  ;;  %v6430_v19 = vld [vmem:[#allocation10 + $0x428] ss:$12 sps:$4 sm:$0xff]  }
 0x204   :  { %4481 = vmatprep.subr.bf16.mxu0 %v6383_v20  ;;  %v6433_v20 = vld [vmem:[#allocation10 + $0x43c] ss:$12 sps:$4 sm:$0xff]  }
 0x205   :  { %5629 = vmatpush3.bf16.msra.mxu1 %v6384_v21  ;;  %v6434_v21 = vld [vmem:[#allocation10 + $0x368] ss:$12 sps:$4 sm:$0xff]  }
 0x206   :  { %5630 = vmatprep.subr.bf16.mxu1 %v6385_v57  ;;  %v6431_v57 = vld [vmem:[#allocation10 + $0x438] ss:$12 sps:$4 sm:$0xff]   ;;  %v6453_v37 = vld [vmem:[#allocation10 + $0x49c] ss:$12 sps:$4 sm:$0xff]  }
 0x207   :  { %4482 = vmatpush1.bf16.msra.mxu0 %v6381_v24  ;;  %v6439_v24 = vld [vmem:[#allocation10 + $0x380] ss:$12 sps:$4 sm:$0xff]  }
 0x208   :  { %4483 = vmatprep.subr.bf16.mxu0 %v6388_v25  ;;  %v6440_v25 = vld [vmem:[#allocation10 + $0x458] ss:$12 sps:$4 sm:$0xff]  }
 0x209   :  { %5631 = vmatpush3.bf16.msra.mxu1 %v6389_v27  ;;  %v6443_v27 = vld [vmem:[#allocation10 + $0x46c] ss:$12 sps:$4 sm:$0xff]  }
 0x20a   :  { %5632 = vmatprep.subr.bf16.mxu1 %v6390_v31  ;;  %v6441_v31 = vld [vmem:[#allocation10 + $0x468] ss:$12 sps:$4 sm:$0xff]  }
 0x20b   :  { %4484 = vmatpush1.bf16.msra.mxu0 %v6386_v35  ;;  %v6450_v35 = vld [vmem:[#allocation10 + $0x548] ss:$12 sps:$4 sm:$0xff]  }
 0x20c   :  { %4485 = vmatprep.subr.bf16.mxu0 %v6393_v39  ;;  %v6455_v39 = vld [vmem:[#allocation10 + $0x560] ss:$12 sps:$4 sm:$0xff]  }
 0x20d   :  { %5633 = vmatpush3.bf16.msra.mxu1 %v6394_v6  ;;  %v6459_v6 = vld [vmem:[#allocation10 + $0x4a0] ss:$12 sps:$4 sm:$0xff]  }
 0x20e   :  { %5634 = vmatprep.subr.bf16.mxu1 %v6395_v18  ;;  %v6456_v18 = vld [vmem:[#allocation10 + $0x4b0] ss:$12 sps:$4 sm:$0xff]  }
 0x20f   :  { %4486 = vmatpush1.bf16.msra.mxu0 %v6391_v50  ;;  %v6464_v50 = vld [vmem:[#allocation10 + $0x4b8] ss:$12 sps:$4 sm:$0xff]  }
 0x210   :  { %4487 = vmatprep.subr.bf16.mxu0 %v6398_v53  ;;  %v6465_v53 = vld [vmem:[#allocation10 + $0x590] ss:$12 sps:$4 sm:$0xff]  }
 0x211   :  { %5635 = vmatpush3.bf16.msra.mxu1 %v6399_v55  ;;  %v6461_v55 = vld [vmem:[#allocation10 + $0x4c8] ss:$12 sps:$4 sm:$0xff]  }
 0x212   :  { %5636 = vmatprep.subr.bf16.mxu1 %v6400_v56  ;;  %v6468_v56 = vld [vmem:[#allocation10 + $0x4e4] ss:$12 sps:$4 sm:$0xff]  }
 0x213   :  { %4488 = vmatpush1.bf16.msra.mxu0 %v6396_v58  ;;  %v6470_v58 = vld [vmem:[#allocation10 + $0x5a8] ss:$12 sps:$4 sm:$0xff]  }
 0x214   :  { %4489 = vmatprep.subr.bf16.mxu0 %v6403_v59  ;;  %v6466_v59 = vld [vmem:[#allocation10 + $0x4e0] ss:$12 sps:$4 sm:$0xff]  }
 0x215   :  { %5637 = vmatpush3.bf16.msra.mxu1 %v6404_v60  ;;  %v6473_v60 = vld [vmem:[#allocation10 + $0x4fc] ss:$12 sps:$4 sm:$0xff]  }
 0x216   :  { %5638 = vmatprep.subr.bf16.mxu1 %v6405_v61  ;;  %v410_v61 = vsub.s32 6, %v6925_v40 }
 0x217   :  { %4490 = vmatpush1.bf16.msra.mxu0 %v6401_v62  ;;  %v6474_v62 = vld [vmem:[#allocation10 + $0x4e8] ss:$12 sps:$4 sm:$0xff]  }
 0x218   :  { %4491 = vmatprep.subr.bf16.mxu0 %v6408_v0  ;;  %v414_v0 = vsub.s32 7, %v6925_v40 }
 0x219   :  { %5639 = vmatpush3.bf16.msra.mxu1 %v6409_v1  ;;  %v6475_v1 = vld [vmem:[#allocation10 + $0x5c0] ss:$12 sps:$4 sm:$0xff]  }
 0x21a   :  { %5646 = vmatprep.subr.bf16.mxu1 %v6410_v2  ;;  %v6471_v2 = vld [vmem:[#allocation10 + $0x4f8] ss:$12 sps:$4 sm:$0xff]  }
 0x21b   :  { %4492 = vmatpush1.bf16.msra.mxu0 %v6406_v3  ;;  %v6642_v3 = vld [vmem:[#allocation9] sm:$0xff] }
 0x21c   :  { %4721 = vmatmul.mubr.bf16.vlgmr.msra.gmra.mrb[20].mxu1 %v6966_v8  ;;  %4493 = vmatprep.subr.bf16.mxu0 %v6413_v4  ;;  %v6428_v8 = vld [vmem:[#allocation10 + $0x424] ss:$12 sps:$4 sm:$0xff]   ;;  %v411_v4 = vrot.slane %v6642_v3, %v410_v61  ;;  %v6519_v61 = vld [vmem:[#allocation10 + $0x680] ss:$12 sps:$4 sm:$0xff]  }
 0x21d   :  { %5647 = vmatpush3.bf16.msra.mxu1 %v6414_v5  ;;  %4761 = vmatprep.mubr.bf16.mxu1 %v6951_v52  ;;  %v6426_v52 = vld [vmem:[#allocation10 + $0x420] ss:$12 sps:$4 sm:$0xff]  }
 0x21e   :  { %5648 = vmatprep.subr.bf16.mxu1 %v6415_v43  ;;  %v6478_v5 = vld [vmem:[#allocation10 + $0x514] ss:$12 sps:$4 sm:$0xff]   ;;  %v415_v43 = vrot.slane %v6642_v3, %v414_v0  ;;  %v6516_v0 = vld [vmem:[#allocation10 + $0x5d0] ss:$12 sps:$4 sm:$0xff]  }
 0x21f   :  { %4494 = vmatpush1.bf16.msra.mxu0 %v6411_v9  ;;  %v6479_v9 = vld [vmem:[#allocation10 + $0x500] ss:$12 sps:$4 sm:$0xff]   ;;  %v6525_v3 = vld [vmem:[#allocation10 + $0x770] ss:$12 sps:$4 sm:$0xff]  }
 0x220   :  { %4495 = vmatprep.subr.bf16.mxu0 %v6418_v10  ;;  %v6480_v10 = vld [vmem:[#allocation10 + $0x5d8] ss:$12 sps:$4 sm:$0xff]  }
 0x221   :  { %5649 = vmatpush3.bf16.msra.mxu1 %v6419_v11 }
 0x222   :  { %5650 = vmatprep.subr.bf16.mxu1 %v6420_v12  ;;  %v6476_v12 = vld [vmem:[#allocation10 + $0x510] ss:$12 sps:$4 sm:$0xff]  }
 0x223   :  { %4496 = vmatpush1.bf16.msra.mxu0 %v6416_v13 }
 0x224   :  { %4497 = vmatprep.subr.bf16.mxu0 %v6423_v14 }
 0x225   :  { %5651 = vmatpush3.bf16.msra.mxu1 %v6424_v15  ;;  %v6483_v15 = vld [vmem:[#allocation10 + $0x52c] ss:$12 sps:$4 sm:$0xff]  }
 0x226   :  { %5652 = vmatprep.subr.bf16.mxu1 %v6425_v7 }
 0x227   :  { %4498 = vmatpush1.bf16.msra.mxu0 %v6421_v16 }
 0x228   :  { %4499 = vmatprep.subr.bf16.mxu0 %v6428_v8  ;;  %v6484_v8 = vld [vmem:[#allocation10 + $0x518] ss:$12 sps:$4 sm:$0xff]  }
 0x229   :  { %5653 = vmatpush3.bf16.msra.mxu1 %v6429_v17 }
 0x22a   :  { %5654 = vmatprep.subr.bf16.mxu1 %v6430_v19 }
 0x22b   :  { %4500 = vmatpush1.bf16.msra.mxu0 %v6426_v52 }
 0x22c   :  { %4501 = vmatprep.subr.bf16.mxu0 %v6433_v20  ;;  %v6485_v20 = vld [vmem:[#allocation10 + $0x5f0] ss:$12 sps:$4 sm:$0xff]  }
 0x22d   :  { %5655 = vmatpush3.bf16.msra.mxu1 %v6434_v21 }
 0x22e   :  { %5656 = vmatprep.subr.bf16.mxu1 %v6435_v22  ;;  %v6481_v22 = vld [vmem:[#allocation10 + $0x528] ss:$12 sps:$4 sm:$0xff]  }
 0x22f   :  { %4502 = vmatpush1.bf16.msra.mxu0 %v6431_v57 }
 0x230   :  { %4503 = vmatprep.subr.bf16.mxu0 %v6438_v23  ;;  %v6488_v23 = vld [vmem:[#allocation10 + $0x544] ss:$12 sps:$4 sm:$0xff]  }
 0x231   :  { %5657 = vmatpush3.bf16.msra.mxu1 %v6439_v24 }
 0x232   :  { %5658 = vmatprep.subr.bf16.mxu1 %v6440_v25 }
 0x233   :  { %4504 = vmatpush1.bf16.msra.mxu0 %v6436_v26  ;;  %v6489_v26 = vld [vmem:[#allocation10 + $0x530] ss:$12 sps:$4 sm:$0xff]  }
 0x234   :  { %4505 = vmatprep.subr.bf16.mxu0 %v6443_v27 }
 0x235   :  { %5659 = vmatpush3.bf16.msra.mxu1 %v6444_v29  ;;  %v6490_v29 = vld [vmem:[#allocation10 + $0x6c8] ss:$12 sps:$4 sm:$0xff]  }
 0x236   :  { %5660 = vmatprep.subr.bf16.mxu1 %v6445_v30 }
 0x237   :  { %4506 = vmatpush1.bf16.msra.mxu0 %v6441_v31  ;;  %v6486_v31 = vld [vmem:[#allocation10 + $0x540] ss:$12 sps:$4 sm:$0xff]  }
 0x238   :  { %4518 = vmatprep.subr.bf16.mxu0 %v6448_v32  ;;  %v6493_v32 = vld [vmem:[#allocation10 + $0x55c] ss:$12 sps:$4 sm:$0xff]  }
 0x239   :  { %5661 = vmatpush3.bf16.msra.mxu1 %v6449_v33  ;;  %v6494_v33 = vld [vmem:[#allocation10 + $0x608] ss:$12 sps:$4 sm:$0xff]  }
 0x23a   :  { %4508 = vmatmul.mubr.bf16.vlgmr.msra.gmra.mrb[8].mxu0 %v6949_v49  ;;  %5668 = vmatprep.subr.bf16.mxu1 %v6450_v35  ;;  %v6495_v35 = vld [vmem:[#allocation10 + $0x6e0] ss:$12 sps:$4 sm:$0xff]  }
 0x23b   :  { %4519 = vmatpush1.bf16.msra.mxu0 %v6446_v36  ;;  %v6491_v36 = vld [vmem:[#allocation10 + $0x558] ss:$12 sps:$4 sm:$0xff]  }
 0x23c   :  { %4762 = vmatmul.mubr.bf16.vlgmr.msra.gmra.mrb[24].mxu1 %v6949_v49  ;;  %4520 = vmatprep.subr.bf16.mxu0 %v6453_v37  ;;  %v6469_v49 = vld [vmem:[#allocation10 + $0x4d0] ss:$12 sps:$4 sm:$0xff]   ;;  %v6498_v37 = vld [vmem:[#allocation10 + $0x574] ss:$12 sps:$4 sm:$0xff]  }
 0x23d   :  { %5669 = vmatpush3.bf16.msra.mxu1 %v6454_v38  ;;  %v6499_v38 = vld [vmem:[#allocation10 + $0x620] ss:$12 sps:$4 sm:$0xff]  }
 0x23e   :  { %5670 = vmatprep.subr.bf16.mxu1 %v6455_v39  ;;  %v6500_v39 = vld [vmem:[#allocation10 + $0x6f8] ss:$12 sps:$4 sm:$0xff]  }
 0x23f   :  { %4521 = vmatpush1.bf16.msra.mxu0 %v6451_v41  ;;  %v6496_v41 = vld [vmem:[#allocation10 + $0x570] ss:$12 sps:$4 sm:$0xff]  }
 0x240   :  { %4522 = vmatprep.subr.bf16.mxu0 %v6458_v42  ;;  %v6503_v42 = vld [vmem:[#allocation10 + $0x58c] ss:$12 sps:$4 sm:$0xff]  }
 0x241   :  { %5671 = vmatpush3.bf16.msra.mxu1 %v6459_v6  ;;  %v6504_v6 = vld [vmem:[#allocation10 + $0x638] ss:$12 sps:$4 sm:$0xff]  }
 0x242   :  { %5672 = vmatprep.subr.bf16.mxu1 %v6460_v47  ;;  %v6505_v47 = vld [vmem:[#allocation10 + $0x710] ss:$12 sps:$4 sm:$0xff]  }
 0x243   :  { %4523 = vmatpush1.bf16.msra.mxu0 %v6456_v18  ;;  %v6501_v18 = vld [vmem:[#allocation10 + $0x588] ss:$12 sps:$4 sm:$0xff]  }
 0x244   :  { %4524 = vmatprep.subr.bf16.mxu0 %v6463_v48  ;;  %v6508_v48 = vld [vmem:[#allocation10 + $0x5a4] ss:$12 sps:$4 sm:$0xff]  }
 0x245   :  { %5673 = vmatpush3.bf16.msra.mxu1 %v6464_v50  ;;  %v6509_v50 = vld [vmem:[#allocation10 + $0x650] ss:$12 sps:$4 sm:$0xff]  }
 0x246   :  { %5674 = vmatprep.subr.bf16.mxu1 %v6465_v53  ;;  %v6510_v53 = vld [vmem:[#allocation10 + $0x728] ss:$12 sps:$4 sm:$0xff]  }
 0x247   :  { %4525 = vmatpush1.bf16.msra.mxu0 %v6461_v55  ;;  %v6506_v55 = vld [vmem:[#allocation10 + $0x5a0] ss:$12 sps:$4 sm:$0xff]  }
 0x248   :  { %4526 = vmatprep.subr.bf16.mxu0 %v6468_v56  ;;  %v6513_v56 = vld [vmem:[#allocation10 + $0x5bc] ss:$12 sps:$4 sm:$0xff]  }
 0x249   :  { %5675 = vmatpush3.bf16.msra.mxu1 %v6469_v49  ;;  %v6514_v49 = vld [vmem:[#allocation10 + $0x668] ss:$12 sps:$4 sm:$0xff]  }
 0x24a   :  { %5676 = vmatprep.subr.bf16.mxu1 %v6470_v58  ;;  %v6515_v58 = vld [vmem:[#allocation10 + $0x740] ss:$12 sps:$4 sm:$0xff]  }
 0x24b   :  { %4527 = vmatpush1.bf16.msra.mxu0 %v6466_v59  ;;  %v6511_v59 = vld [vmem:[#allocation10 + $0x5b8] ss:$12 sps:$4 sm:$0xff]  }
 0x24c   :  { %4528 = vmatprep.subr.bf16.mxu0 %v6473_v60  ;;  %v6518_v60 = vld [vmem:[#allocation10 + $0x5d4] ss:$12 sps:$4 sm:$0xff]  }
 0x24d   :  { %5677 = vmatpush3.bf16.msra.mxu1 %v6474_v62  ;;  %v6520_v62 = vld [vmem:[#allocation10 + $0x758] ss:$12 sps:$4 sm:$0xff]  }
 0x24e   :  { %5678 = vmatprep.subr.bf16.mxu1 %v6475_v1  ;;  %v6523_v1 = vld [vmem:[#allocation10 + $0x5ec] ss:$12 sps:$4 sm:$0xff]  }
 0x24f   :  { %4529 = vmatpush1.bf16.msra.mxu0 %v6471_v2  ;;  %v2235_v11 = vpop.f32.mrb[8].mxu1  ;;  %v6524_v2 = vld [vmem:[#allocation10 + $0x698] ss:$12 sps:$4 sm:$0xff]  }
 0x250   :  { %v5746_v13 = vadd.f32 %v2235_v11, %v411_v4  ;;  %v2237_v14 = vpop.f32.mrb[9].mxu1  ;;  %4530 = vmatprep.subr.bf16.mxu0 %v6478_v5  ;;  %v6528_v5 = vld [vmem:[#allocation10 + $0x604] ss:$12 sps:$4 sm:$0xff]   ;;  %v6532_v11 = vld [vmem:[#allocation10 + $0x61c] ss:$12 sps:$4 sm:$0xff]  }
 0x251   :  { %v5747_v7 = vadd.f32 %v2237_v14, %v415_v43  ;;  %v2239_v16 = vpop.f32.mrb[10].mxu1  ;;  %5679 = vmatpush3.bf16.msra.mxu1 %v6479_v9  ;;  %v6554_v9 = vld [vmem:[#allocation10 + $0x848] ss:$12 sps:$4 sm:$0xff]   ;;  %v6530_v14 = vld [vmem:[#allocation10 + $0x618] ss:$12 sps:$4 sm:$0xff]  }
 0x252   :  { %v2422_v17 = vmax.f32 %v5746_v13, 0.0  ;;  %v5748_v19 = vadd.f32 %v2239_v16, %v411_v4  ;;  %v2241_v52 = vpop.f32.mrb[11].mxu1  ;;  %5680 = vmatprep.subr.bf16.mxu1 %v6480_v10  ;;  %v6521_v4 = vld [vmem:[#allocation10 + $0x5e8] ss:$12 sps:$4 sm:$0xff]   ;;  %v6526_v10 = vld [vmem:[#allocation10 + $0x600] ss:$12 sps:$4 sm:$0xff]  }
 0x253   :  { %v5749_v21 = vadd.f32 %v2241_v52, %v415_v43  ;;  %4531 = vmatpush1.bf16.msra.mxu0 %v6476_v12  ;;  %v2423_v24 = vmax.f32 %v5747_v7, 0.0  ;;  %v6529_v43 = vld [vmem:[#allocation10 + $0x6b0] ss:$12 sps:$4 sm:$0xff]   ;;  %v6555_v12 = vld [vmem:[#allocation10 + $0x788] ss:$12 sps:$4 sm:$0xff]  }
 0x254   :  { %v2434_v57 = vmax.f32 %v5748_v19, 0.0  ;;  %4532 = vmatprep.subr.bf16.mxu0 %v6483_v15  ;;  %v6559_v13 = vld [vmem:[#allocation10 + $0x860] ss:$12 sps:$4 sm:$0xff]   ;;  %v6564_v16 = vld [vmem:[#allocation10 + $0x878] ss:$12 sps:$4 sm:$0xff]  }
 0x255   :  { %v2435_v25 = vmax.f32 %v5749_v21, 0.0  ;;  %5681 = vmatpush3.bf16.msra.mxu1 %v6484_v8  ;;  %v6535_v15 = vld [vmem:[#allocation10 + $0x634] ss:$12 sps:$4 sm:$0xff]   ;;  %v6533_v8 = vld [vmem:[#allocation10 + $0x630] ss:$12 sps:$4 sm:$0xff]  }
 0x256   :  { %v6987_v27 = vpack.c.bf16 %v2434_v57, %v2422_v17  ;;  %5682 = vmatprep.subr.bf16.mxu1 %v6485_v20  ;;  %v6560_v7 = vld [vmem:[#allocation10 + $0x7a0] ss:$12 sps:$4 sm:$0xff]   ;;  %v6565_v19 = vld [vmem:[#allocation10 + $0x7b8] ss:$12 sps:$4 sm:$0xff]   ;;  %v6569_v52 = vld [vmem:[#allocation10 + $0x890] ss:$12 sps:$4 sm:$0xff]  }
 0x257   :  { %v2447_v30 = vpack.c.bf16 %v2435_v25, %v2423_v24  ;;  %4533 = vmatpush1.bf16.msra.mxu0 %v6481_v22  ;;  %v6538_v17 = vld [vmem:[#allocation10 + $0x64c] ss:$12 sps:$4 sm:$0xff]   ;;  %v6536_v20 = vld [vmem:[#allocation10 + $0x648] ss:$12 sps:$4 sm:$0xff]   ;;  %v6570_v21 = vld [vmem:[#allocation10 + $0x7d0] ss:$12 sps:$4 sm:$0xff]  }
 0x258   :  { %4534 = vmatprep.subr.bf16.mxu0 %v6488_v23  ;;  %v6574_v22 = vld [vmem:[#allocation10 + $0x8a8] ss:$12 sps:$4 sm:$0xff]   ;;  %v6539_v57 = vld [vmem:[#allocation10 + $0x660] ss:$12 sps:$4 sm:$0xff]  }
 0x259   :  { %4550 = vmatprep.mubr.bf16.mxu0 %v2447_v30  ;;  %5683 = vmatpush3.bf16.msra.mxu1 %v6489_v26  ;;  %v6544_v23 = vld [vmem:[#allocation10 + $0x67c] ss:$12 sps:$4 sm:$0xff]   ;;  %v6579_v25 = vld [vmem:[#allocation10 + $0x8c0] ss:$12 sps:$4 sm:$0xff]   ;;  %v6542_v26 = vld [vmem:[#allocation10 + $0x678] ss:$12 sps:$4 sm:$0xff]  }
 0x25a   :  { %4802 = vmatprep.mubr.bf16.mxu1 %v2447_v30  ;;  %5690 = vmatprep.subr.bf16.mxu1 %v6490_v29  ;;  %v6575_v24 = vld [vmem:[#allocation10 + $0x7e8] ss:$12 sps:$4 sm:$0xff]   ;;  %v6580_v29 = vld [vmem:[#allocation10 + $0x800] ss:$12 sps:$4 sm:$0xff]   ;;  %v6584_v30 = vld [vmem:[#allocation10 + $0x8d8] ss:$12 sps:$4 sm:$0xff]  }
 0x25b   :  { %4535 = vmatpush1.bf16.msra.mxu0 %v6486_v31  ;;  %v6545_v31 = vld [vmem:[#allocation10 + $0x690] ss:$12 sps:$4 sm:$0xff]  }
 0x25c   :  { %4803 = vmatmul.mubr.bf16.vlgmr.msra.gmra.mrb[28].mxu1 %v6987_v27  ;;  %4536 = vmatprep.subr.bf16.mxu0 %v6493_v32  ;;  %v6550_v32 = vld [vmem:[#allocation10 + $0x6ac] ss:$12 sps:$4 sm:$0xff]  }
 0x25d   :  { %5691 = vmatpush3.bf16.msra.mxu1 %v6494_v33  ;;  %4843 = vmatprep.mubr.bf16.mxu1 %v6979_v54  ;;  %v6585_v33 = vld [vmem:[#allocation10 + $0x818] ss:$12 sps:$4 sm:$0xff]  }
 0x25e   :  { %5692 = vmatprep.subr.bf16.mxu1 %v6495_v35  ;;  %v6589_v35 = vld [vmem:[#allocation10 + $0x8f0] ss:$12 sps:$4 sm:$0xff]  }
 0x25f   :  { %4537 = vmatpush1.bf16.msra.mxu0 %v6491_v36  ;;  %v6548_v36 = vld [vmem:[#allocation10 + $0x6a8] ss:$12 sps:$4 sm:$0xff]  }
 0x260   :  { %4538 = vmatprep.subr.bf16.mxu0 %v6498_v37  ;;  %v6553_v37 = vld [vmem:[#allocation10 + $0x6c4] ss:$12 sps:$4 sm:$0xff]  }
 0x261   :  { %5693 = vmatpush3.bf16.msra.mxu1 %v6499_v38  ;;  %v6590_v38 = vld [vmem:[#allocation10 + $0x830] ss:$12 sps:$4 sm:$0xff]  }
 0x262   :  { %5694 = vmatprep.subr.bf16.mxu1 %v6500_v39  ;;  %v6551_v39 = vld [vmem:[#allocation10 + $0x6c0] ss:$12 sps:$4 sm:$0xff]  }
 0x263   :  { %4539 = vmatpush1.bf16.msra.mxu0 %v6496_v41  ;;  %v6558_v41 = vld [vmem:[#allocation10 + $0x6dc] ss:$12 sps:$4 sm:$0xff]  }
 0x264   :  { %4540 = vmatprep.subr.bf16.mxu0 %v6503_v42  ;;  %v6556_v42 = vld [vmem:[#allocation10 + $0x6d8] ss:$12 sps:$4 sm:$0xff]  }
 0x265   :  { %5695 = vmatpush3.bf16.msra.mxu1 %v6504_v6  ;;  %v6563_v6 = vld [vmem:[#allocation10 + $0x6f4] ss:$12 sps:$4 sm:$0xff]  }
 0x266   :  { %5696 = vmatprep.subr.bf16.mxu1 %v6505_v47  ;;  %v6561_v47 = vld [vmem:[#allocation10 + $0x6f0] ss:$12 sps:$4 sm:$0xff]  }
 0x267   :  { %4541 = vmatpush1.bf16.msra.mxu0 %v6501_v18  ;;  %v6568_v18 = vld [vmem:[#allocation10 + $0x70c] ss:$12 sps:$4 sm:$0xff]  }
 0x268   :  { %4542 = vmatprep.subr.bf16.mxu0 %v6508_v48  ;;  %v6566_v48 = vld [vmem:[#allocation10 + $0x708] ss:$12 sps:$4 sm:$0xff]  }
 0x269   :  { %5697 = vmatpush3.bf16.msra.mxu1 %v6509_v50  ;;  %v6573_v50 = vld [vmem:[#allocation10 + $0x724] ss:$12 sps:$4 sm:$0xff]  }
 0x26a   :  { %5698 = vmatprep.subr.bf16.mxu1 %v6510_v53  ;;  %v6571_v53 = vld [vmem:[#allocation10 + $0x720] ss:$12 sps:$4 sm:$0xff]  }
 0x26b   :  { %4543 = vmatpush1.bf16.msra.mxu0 %v6506_v55  ;;  %v6578_v55 = vld [vmem:[#allocation10 + $0x73c] ss:$12 sps:$4 sm:$0xff]  }
 0x26c   :  { %4544 = vmatprep.subr.bf16.mxu0 %v6513_v56  ;;  %v6576_v56 = vld [vmem:[#allocation10 + $0x738] ss:$12 sps:$4 sm:$0xff]  }
 0x26d   :  { %5699 = vmatpush3.bf16.msra.mxu1 %v6514_v49  ;;  %v427_v49 = vrot.slane %v6971_v63, %v6958_v46 }
 0x26e   :  { %5700 = vmatprep.subr.bf16.mxu1 %v6515_v58  ;;  %v6583_v58 = vld [vmem:[#allocation10 + $0x754] ss:$12 sps:$4 sm:$0xff]  }
 0x26f   :  { %4545 = vmatpush1.bf16.msra.mxu0 %v6511_v59  ;;  %v431_v59 = vrot.slane %v6971_v63, %v398_v34 }
 0x270   :  { %4546 = vmatprep.subr.bf16.mxu0 %v6518_v60 }
 0x271   :  { %5701 = vmatpush3.bf16.msra.mxu1 %v6519_v61  ;;  %v6581_v61 = vld [vmem:[#allocation10 + $0x750] ss:$12 sps:$4 sm:$0xff]  }
 0x272   :  { %5702 = vmatprep.subr.bf16.mxu1 %v6520_v62 }
 0x273   :  { %4547 = vmatpush1.bf16.msra.mxu0 %v6516_v0 }
 0x274   :  { %4548 = vmatprep.subr.bf16.mxu0 %v6523_v1  ;;  %v6588_v1 = vld [vmem:[#allocation10 + $0x76c] ss:$12 sps:$4 sm:$0xff]  }
 0x275   :  { %5703 = vmatpush3.bf16.msra.mxu1 %v6524_v2 }
 0x276   :  { %5704 = vmatprep.subr.bf16.mxu1 %v6525_v3 }
 0x277   :  { %4549 = vmatpush1.bf16.msra.mxu0 %v6521_v4 }
 0x278   :  { %4561 = vmatprep.subr.bf16.mxu0 %v6528_v5 }
 0x279   :  { %5705 = vmatpush3.bf16.msra.mxu1 %v6529_v43 }
 0x27a   :  { %4551 = vmatmul.mubr.bf16.vlgmr.msra.gmra.mrb[8].mxu0 %v6987_v27  ;;  %5712 = vmatprep.subr.bf16.mxu1 %v6554_v9  ;;  %v6547_v27 = vld [vmem:[#allocation10 + $0x694] ss:$12 sps:$4 sm:$0xff]  }
 0x27b   :  { %4562 = vmatpush1.bf16.msra.mxu0 %v6526_v10  ;;  %4593 = vmatprep.mubr.bf16.mxu0 %v6979_v54  ;;  %v6541_v54 = vld [vmem:[#allocation10 + $0x664] ss:$12 sps:$4 sm:$0xff]  }
 0x27c   :  { %4844 = vmatmul.mubr.bf16.vlgmr.msra.gmra.mrb[32].mxu1 %v6977_v51  ;;  %4563 = vmatprep.subr.bf16.mxu0 %v6532_v11  ;;  %v6586_v11 = vld [vmem:[#allocation10 + $0x768] ss:$12 sps:$4 sm:$0xff]  }
 0x27d   :  { %5713 = vmatpush3.bf16.msra.mxu1 %v6555_v12 }
 0x27e   :  { %5714 = vmatprep.subr.bf16.mxu1 %v6559_v13  ;;  %v6593_v13 = vld [vmem:[#allocation10 + $0x784] ss:$12 sps:$4 sm:$0xff]  }
 0x27f   :  { %4564 = vmatpush1.bf16.msra.mxu0 %v6530_v14 }
 0x280   :  { %4565 = vmatprep.subr.bf16.mxu0 %v6535_v15  ;;  %v6591_v15 = vld [vmem:[#allocation10 + $0x780] ss:$12 sps:$4 sm:$0xff]  }
 0x281   :  { %5715 = vmatpush3.bf16.msra.mxu1 %v6560_v7  ;;  %v6596_v7 = vld [vmem:[#allocation10 + $0x79c] ss:$12 sps:$4 sm:$0xff]  }
 0x282   :  { %5716 = vmatprep.subr.bf16.mxu1 %v6564_v16  ;;  %v6594_v16 = vld [vmem:[#allocation10 + $0x798] ss:$12 sps:$4 sm:$0xff]  }
 0x283   :  { %4566 = vmatpush1.bf16.msra.mxu0 %v6533_v8  ;;  %v6599_v8 = vld [vmem:[#allocation10 + $0x7b4] ss:$12 sps:$4 sm:$0xff]  }
 0x284   :  { %4567 = vmatprep.subr.bf16.mxu0 %v6538_v17  ;;  %v6597_v17 = vld [vmem:[#allocation10 + $0x7b0] ss:$12 sps:$4 sm:$0xff]  }
 0x285   :  { %5717 = vmatpush3.bf16.msra.mxu1 %v6565_v19  ;;  %v6602_v19 = vld [vmem:[#allocation10 + $0x7cc] ss:$12 sps:$4 sm:$0xff]  }
 0x286   :  { %5718 = vmatprep.subr.bf16.mxu1 %v6569_v52  ;;  %v6600_v52 = vld [vmem:[#allocation10 + $0x7c8] ss:$12 sps:$4 sm:$0xff]  }
 0x287   :  { %4568 = vmatpush1.bf16.msra.mxu0 %v6536_v20  ;;  %v6605_v20 = vld [vmem:[#allocation10 + $0x7e4] ss:$12 sps:$4 sm:$0xff]  }
 0x288   :  { %4569 = vmatprep.subr.bf16.mxu0 %v6541_v54  ;;  %v6603_v54 = vld [vmem:[#allocation10 + $0x7e0] ss:$12 sps:$4 sm:$0xff]  }
 0x289   :  { %5719 = vmatpush3.bf16.msra.mxu1 %v6570_v21  ;;  %v6608_v21 = vld [vmem:[#allocation10 + $0x7fc] ss:$12 sps:$4 sm:$0xff]  }
 0x28a   :  { %5720 = vmatprep.subr.bf16.mxu1 %v6574_v22  ;;  %v6611_v22 = vld [vmem:[#allocation10 + $0x814] ss:$12 sps:$4 sm:$0xff]  }
 0x28b   :  { %4570 = vmatpush1.bf16.msra.mxu0 %v6539_v57 }
 0x28c   :  { %4571 = vmatprep.subr.bf16.mxu0 %v6544_v23  ;;  %v6609_v23 = vld [vmem:[#allocation10 + $0x810] ss:$12 sps:$4 sm:$0xff]  }
 0x28d   :  { %5721 = vmatpush3.bf16.msra.mxu1 %v6575_v24 }
 0x28e   :  { %5722 = vmatprep.subr.bf16.mxu1 %v6579_v25  ;;  %v6614_v25 = vld [vmem:[#allocation10 + $0x82c] ss:$12 sps:$4 sm:$0xff]  }
 0x28f   :  { %4572 = vmatpush1.bf16.msra.mxu0 %v6542_v26 }
 0x290   :  { %4573 = vmatprep.subr.bf16.mxu0 %v6547_v27 }
 0x291   :  { %5723 = vmatpush3.bf16.msra.mxu1 %v6580_v29 }
 0x292   :  { %5724 = vmatprep.subr.bf16.mxu1 %v6584_v30 }
 0x293   :  { %4574 = vmatpush1.bf16.msra.mxu0 %v6545_v31  ;;  %v6612_v31 = vld [vmem:[#allocation10 + $0x828] ss:$12 sps:$4 sm:$0xff]  }
 0x294   :  { %4575 = vmatprep.subr.bf16.mxu0 %v6550_v32  ;;  %v6617_v32 = vld [vmem:[#allocation10 + $0x844] ss:$12 sps:$4 sm:$0xff]  }
 0x295   :  { %5725 = vmatpush3.bf16.msra.mxu1 %v6585_v33  ;;  %v6615_v33 = vld [vmem:[#allocation10 + $0x840] ss:$12 sps:$4 sm:$0xff]  }
 0x296   :  { %5726 = vmatprep.subr.bf16.mxu1 %v6589_v35  ;;  %v6620_v35 = vld [vmem:[#allocation10 + $0x85c] ss:$12 sps:$4 sm:$0xff]  }
 0x297   :  { %4576 = vmatpush1.bf16.msra.mxu0 %v6548_v36  ;;  %v6618_v36 = vld [vmem:[#allocation10 + $0x858] ss:$12 sps:$4 sm:$0xff]  }
 0x298   :  { %4577 = vmatprep.subr.bf16.mxu0 %v6553_v37  ;;  %v6623_v37 = vld [vmem:[#allocation10 + $0x874] ss:$12 sps:$4 sm:$0xff]  }
 0x299   :  { %5727 = vmatpush3.bf16.msra.mxu1 %v6590_v38  ;;  %v6621_v38 = vld [vmem:[#allocation10 + $0x870] ss:$12 sps:$4 sm:$0xff]  }
 0x29b   :  { %4578 = vmatpush1.bf16.msra.mxu0 %v6551_v39  ;;  %v6626_v39 = vld [vmem:[#allocation10 + $0x88c] ss:$12 sps:$4 sm:$0xff]  }
 0x29c   :  { %4579 = vmatprep.subr.bf16.mxu0 %v6558_v41  ;;  %v6624_v41 = vld [vmem:[#allocation10 + $0x888] ss:$12 sps:$4 sm:$0xff]  }
 0x29f   :  { %4580 = vmatpush1.bf16.msra.mxu0 %v6556_v42  ;;  %v6629_v42 = vld [vmem:[#allocation10 + $0x8a4] ss:$12 sps:$4 sm:$0xff]  }
 0x2a0   :  { %4581 = vmatprep.subr.bf16.mxu0 %v6563_v6  ;;  %v6627_v6 = vld [vmem:[#allocation10 + $0x8a0] ss:$12 sps:$4 sm:$0xff]  }
 0x2a3   :  { %4582 = vmatpush1.bf16.msra.mxu0 %v6561_v47  ;;  %v6632_v47 = vld [vmem:[#allocation10 + $0x8bc] ss:$12 sps:$4 sm:$0xff]  }
 0x2a4   :  { %4583 = vmatprep.subr.bf16.mxu0 %v6568_v18  ;;  %v7003_v18 = vld [vmem:[#allocation12] sm:$0x7] }
 0x2a7   :  { %4584 = vmatpush1.bf16.msra.mxu0 %v6566_v48  ;;  %v6630_v48 = vld [vmem:[#allocation10 + $0x8b8] ss:$12 sps:$4 sm:$0xff]  }
 0x2a8   :  { %4585 = vmatprep.subr.bf16.mxu0 %v6573_v50  ;;  %v6635_v50 = vld [vmem:[#allocation10 + $0x8d4] ss:$12 sps:$4 sm:$0xff]  }
 0x2ab   :  { %4586 = vmatpush1.bf16.msra.mxu0 %v6571_v53  ;;  %v2849_v53 = vrot.slane %v7003_v18, %v6958_v46 }
 0x2ac   :  { %4587 = vmatprep.subr.bf16.mxu0 %v6578_v55 }
 0x2af   :  { %4588 = vmatpush1.bf16.msra.mxu0 %v6576_v56  ;;  %v2407_v60 = vpop.f32.mrb[12].mxu1  ;;  %v6633_v56 = vld [vmem:[#allocation10 + $0x8d0] ss:$12 sps:$4 sm:$0xff]  }
 0x2b0   :  { %v5754_v62 = vadd.f32 %v2407_v60, %v427_v49  ;;  %v2409_v0 = vpop.f32.mrb[13].mxu1  ;;  %4589 = vmatprep.subr.bf16.mxu0 %v6583_v58  ;;  %v6638_v58 = vld [vmem:[#allocation10 + $0x8ec] ss:$12 sps:$4 sm:$0xff]  }
 0x2b1   :  { %v5755_v2 = vadd.f32 %v2409_v0, %v431_v59  ;;  %v2411_v3 = vpop.f32.mrb[14].mxu1 }
 0x2b2   :  { %v2426_v4 = vmax.f32 %v5754_v62, 0.0  ;;  %v5756_v5 = vadd.f32 %v2411_v3, %v427_v49  ;;  %v2413_v43 = vpop.f32.mrb[15].mxu1  ;;  %v6636_v3 = vld [vmem:[#allocation10 + $0x8e8] ss:$12 sps:$4 sm:$0xff]  }
 0x2b3   :  { %v2427_v9 = vmax.f32 %v5755_v2, 0.0  ;;  %v5757_v10 = vadd.f32 %v2413_v43, %v431_v59  ;;  %4590 = vmatpush1.bf16.msra.mxu0 %v6581_v61 }
 0x2b4   :  { %v2438_v12 = vmax.f32 %v5756_v5, 0.0  ;;  %4591 = vmatprep.subr.bf16.mxu0 %v6588_v1 }
 0x2b5   :  { %v2439_v34 = vmax.f32 %v5757_v10, 0.0 }
 0x2b6   :  { %v6999_v63 = vpack.c.bf16 %v2438_v12, %v2426_v4 }
 0x2b7   :  { %v2451_v14 = vpack.c.bf16 %v2439_v34, %v2427_v9  ;;  %4592 = vmatpush1.bf16.msra.mxu0 %v6586_v11 }
 0x2b8   :  { %4604 = vmatprep.subr.bf16.mxu0 %v6593_v13 }
 0x2b9   :  { %4884 = vmatprep.mubr.bf16.mxu1 %v2451_v14 }
 0x2ba   :  { %4594 = vmatmul.mubr.bf16.vlgmr.msra.gmra.mrb[8].mxu0 %v6977_v51  ;;  %4885 = vmatmul.mubr.bf16.vlgmr.msra.gmra.mrb[36].mxu1 %v6999_v63  ;;  %v6606_v51 = vld [vmem:[#allocation10 + $0x7f8] ss:$12 sps:$4 sm:$0xff]  }
 0x2bb   :  { %4605 = vmatpush1.bf16.msra.mxu0 %v6591_v15  ;;  %4636 = vmatprep.mubr.bf16.mxu0 %v2451_v14 }
 0x2bc   :  { %4606 = vmatprep.subr.bf16.mxu0 %v6596_v7 }
 0x2bf   :  { %4607 = vmatpush1.bf16.msra.mxu0 %v6594_v16 }
 0x2c0   :  { %4608 = vmatprep.subr.bf16.mxu0 %v6599_v8 }
 0x2c3   :  { %4609 = vmatpush1.bf16.msra.mxu0 %v6597_v17 }
 0x2c4   :  { %4610 = vmatprep.subr.bf16.mxu0 %v6602_v19 }
 0x2c7   :  { %4611 = vmatpush1.bf16.msra.mxu0 %v6600_v52 }
 0x2c8   :  { %4612 = vmatprep.subr.bf16.mxu0 %v6605_v20 }
 0x2cb   :  { %4613 = vmatpush1.bf16.msra.mxu0 %v6603_v54 }
 0x2cc   :  { %4614 = vmatprep.subr.bf16.mxu0 %v6608_v21 }
 0x2cf   :  { %4615 = vmatpush1.bf16.msra.mxu0 %v6606_v51  ;;  %v5618_v57 = vpop.f32.mrb[16].mxu1 }
 0x2d0   :  { %v5619_v24 = vpop.f32.mrb[17].mxu1  ;;  %4616 = vmatprep.subr.bf16.mxu0 %v6611_v22 }
 0x2d1   :  { %v5620_v26 = vadd.f32 %v5619_v24, %v5618_v57  ;;  %v5621_v27 = vpop.f32.mrb[18].mxu1  ;;  %v4895_v24 = vadd.s32 8, %v6925_v40 }
 0x2d2   :  { %v5622_v29 = vpop.f32.mrb[19].mxu1 }
 0x2d3   :  { %4617 = vmatpush1.bf16.msra.mxu0 %v6609_v23  ;;  %v5623_v30 = vadd.f32 %v5622_v29, %v5621_v27  ;;  %v4682_v59 = vadd.f32 %v5620_v26, %v2849_v53  ;;  %v4897_v23 = vand.u32 127, %v384_v28  ;;  %v4904_v26 = vmul.u32 384, %v6925_v40 }
 0x2d4   :  { %4618 = vmatprep.subr.bf16.mxu0 %v6614_v25  ;;  %v4905_v27 = vmul.u32 384, %v4895_v24 }
 0x2d5   :  { %v4685_v0 = vadd.f32 %v5623_v30, %v2849_v53  ;;  %v4899_v25 = vadd.s32 256, %v4897_v23 }
 0x2d7   :  { %4619 = vmatpush1.bf16.msra.mxu0 %v6612_v31  ;;  %v4908_v29 = vadd.s32 %v4904_v26, %v4899_v25  ;;  %v4911_v30 = vadd.s32 %v4905_v27, %v4899_v25 }
 0x2d8   :  { %4620 = vmatprep.subr.bf16.mxu0 %v6617_v32  ;;  %v4919_v32 = vstv %s7030_s0  ;;  %s6793_s0 = smov [#allocation13]  }
 0x2d9   :  { %v4914_v31 = vmul.u32 2654435769, %v4908_v29  ;;  %s5009_s4 = sshll.u32 %s6793_s0, 4  ;;  %s5010_s4 = int_to_ptr.vmem [resolvable:$true] %s5009_s4 }
 0x2da   :  { %s6753_s10 = scalar_lea.vmem %s5010_s4, 768  ;;  %p6758_p13 = scmp.lt.s32.totalorder %s5010_s4, %s5010_s4 }
 0x2db   :  { %4621 = vmatpush1.bf16.msra.mxu0 %v6615_v33  ;;  %v4917_v33 = vmul.u32 2654435769, %v4911_v30  ;;  %p6754_p12 = scmp.ne.s32.totalorder %s5010_s4, %s6753_s10  ;;  %p6759_p0 = scmp.lt.s32.totalorder %s6753_s10, %s6753_s10 }
 0x2dc   :  { %4622 = vmatprep.subr.bf16.mxu0 %v6620_v35  ;;  %v4922_v35 = vadd.s32 %v4919_v32, %v4914_v31 }
 0x2dd   :  { %p6760_p1 = por %p6759_p0, %p6758_p13 }
 0x2df   :  { %4623 = vmatpush1.bf16.msra.mxu0 %v6618_v36  ;;  %v4925_v36 = vadd.s32 %v4919_v32, %v4917_v33  ;;  %p6761_p2 = pnand %p6760_p1, %p6754_p12 }
 0x2e0   :  { %4624 = vmatprep.subr.bf16.mxu0 %v6623_v37  ;;  %v4928_v37 = vshrl.u32 %v4922_v35, 16 }
 0x2e3   :  { %4625 = vmatpush1.bf16.msra.mxu0 %v6621_v38  ;;  %v4931_v38 = vshrl.u32 %v4925_v36, 16 }
 0x2e4   :  { %4626 = vmatprep.subr.bf16.mxu0 %v6626_v39  ;;  %v4934_v39 = vxor.u32 %v4928_v37, %v4922_v35 }
 0x2e5   :  { %v4937_v28 = vxor.u32 %v4931_v38, %v4925_v36 }
 0x2e7   :  { %4627 = vmatpush1.bf16.msra.mxu0 %v6624_v41  ;;  %v4940_v41 = vmul.u32 2246822507, %v4934_v39 }
 0x2e8   :  { %4628 = vmatprep.subr.bf16.mxu0 %v6629_v42  ;;  %v4943_v42 = vmul.u32 2246822507, %v4937_v28 }
 0x2eb   :  { %4629 = vmatpush1.bf16.msra.mxu0 %v6627_v6  ;;  %v4946_v6 = vshrl.u32 %v4940_v41, 13 }
 0x2ec   :  { %4630 = vmatprep.subr.bf16.mxu0 %v6632_v47  ;;  %v4949_v47 = vshrl.u32 %v4943_v42, 13 }
 0x2ed   :  { %v4952_v40 = vxor.u32 %v4946_v6, %v4940_v41 }
 0x2ef   :  { %4631 = vmatpush1.bf16.msra.mxu0 %v6630_v48  ;;  %v5640_v55 = vpop.f32.mrb[20].mxu1  ;;  %v4955_v48 = vxor.u32 %v4949_v47, %v4943_v42 }
 0x2f0   :  { %v5641_v49 = vpop.f32.mrb[21].mxu1  ;;  %4632 = vmatprep.subr.bf16.mxu0 %v6635_v50  ;;  %v4958_v50 = vmul.u32 3266489909, %v4952_v40 }
 0x2f1   :  { %v5642_v60 = vadd.f32 %v5641_v49, %v5640_v55  ;;  %v5643_v61 = vpop.f32.mrb[22].mxu1  ;;  %v4961_v53 = vmul.u32 3266489909, %v4955_v48 }
 0x2f2   :  { %v5644_v62 = vpop.f32.mrb[23].mxu1  ;;  %v4964_v55 = vshrl.u32 %v4958_v50, 16 }
 0x2f3   :  { %v4723_v1 = vadd.f32 %v5642_v60, %v4682_v59  ;;  %4633 = vmatpush1.bf16.msra.mxu0 %v6633_v56  ;;  %v5645_v2 = vadd.f32 %v5644_v62, %v5643_v61  ;;  %v4967_v56 = vshrl.u32 %v4961_v53, 16 }
 0x2f4   :  { %4634 = vmatprep.subr.bf16.mxu0 %v6638_v58  ;;  %v4970_v49 = vxor.u32 %v4964_v55, %v4958_v50 }
 0x2f5   :  { %v4726_v4 = vadd.f32 %v5645_v2, %v4685_v0  ;;  %v4973_v58 = vxor.u32 %v4967_v56, %v4961_v53  ;;  %v2841_v56 = vrot.slane %v7003_v18, %v6930_v44 }
 0x2f6   :  { %v4976_v61 = vand.u32 2147483647, %v4970_v49 }
 0x2f7   :  { %4635 = vmatpush1.bf16.msra.mxu0 %v6636_v3  ;;  %v4979_v2 = vand.u32 2147483647, %v4973_v58 }
 0x2f8   :  { %vm4982_vm0 = vcmp.ge.s32.totalorder %v4976_v61, 429496730 }
 0x2f9   :  { %vm4985_vm1 = vcmp.ge.s32.totalorder %v4979_v2, 429496730 }
 0x2fa   :  { %4637 = vmatmul.mubr.bf16.vlgmr.msra.gmra.mrb[8].mxu0 %v6999_v63 }
 0x30f   :  { %v5662_v46 = vpop.f32.mrb[24].mxu1 }
 0x310   :  { %v5663_v5 = vpop.f32.mrb[25].mxu1 }
 0x311   :  { %v5664_v43 = vadd.f32 %v5663_v5, %v5662_v46  ;;  %v5665_v9 = vpop.f32.mrb[26].mxu1 }
 0x312   :  { %v5666_v10 = vpop.f32.mrb[27].mxu1 }
 0x313   :  { %v4764_v11 = vadd.f32 %v5664_v43, %v4723_v1  ;;  %v5667_v12 = vadd.f32 %v5666_v10, %v5665_v9 }
 0x315   :  { %v4767_v13 = vadd.f32 %v5667_v12, %v4726_v4  ;;  %v4906_v12 = vadd.s32 %v4904_v26, %v4897_v23 }
 0x32f   :  { %v5684_v34 = vpop.f32.mrb[28].mxu1 }
 0x330   :  { %v5685_v14 = vpop.f32.mrb[29].mxu1 }
 0x331   :  { %v5686_v15 = vadd.f32 %v5685_v14, %v5684_v34  ;;  %v5687_v7 = vpop.f32.mrb[30].mxu1  ;;  %v4909_v34 = vadd.s32 %v4905_v27, %v4897_v23 }
 0x332   :  { %v5688_v16 = vpop.f32.mrb[31].mxu1 }
 0x333   :  { %v4805_v8 = vadd.f32 %v5686_v15, %v4764_v11  ;;  %v5689_v17 = vadd.f32 %v5688_v16, %v5687_v7  ;;  %v4898_v11 = vadd.s32 128, %v4897_v23  ;;  %v4912_v15 = vmul.u32 2654435769, %v4906_v12 }
 0x334   :  { %v4915_v16 = vmul.u32 2654435769, %v4909_v34 }
 0x335   :  { %v4808_v19 = vadd.f32 %v5689_v17, %v4767_v13  ;;  %v4907_v13 = vadd.s32 %v4904_v26, %v4898_v11  ;;  %v4910_v14 = vadd.s32 %v4905_v27, %v4898_v11  ;;  %v4920_v17 = vadd.s32 %v4919_v32, %v4912_v15 }
 0x337   :  { %v4913_v7 = vmul.u32 2654435769, %v4907_v13 }
 0x34f   :  { %v5706_v52 = vpop.f32.mrb[32].mxu1 }
 0x350   :  { %v5707_v20 = vpop.f32.mrb[33].mxu1 }
 0x351   :  { %v5708_v54 = vadd.f32 %v5707_v20, %v5706_v52  ;;  %v5709_v63 = vpop.f32.mrb[34].mxu1  ;;  %v4923_v52 = vadd.s32 %v4919_v32, %v4915_v16 }
 0x352   :  { %v5710_v21 = vpop.f32.mrb[35].mxu1 }
 0x353   :  { %v4846_v51 = vadd.f32 %v5708_v54, %v4805_v8  ;;  %v5711_v22 = vadd.f32 %v5710_v21, %v5709_v63  ;;  %v4916_v8 = vmul.u32 2654435769, %v4910_v14  ;;  %v4926_v54 = vshrl.u32 %v4920_v17, 16 }
 0x354   :  { %v4929_v21 = vshrl.u32 %v4923_v52, 16 }
 0x355   :  { %v4849_v57 = vadd.f32 %v5711_v22, %v4808_v19  ;;  %v4921_v19 = vadd.s32 %v4919_v32, %v4913_v7  ;;  %v4924_v20 = vadd.s32 %v4919_v32, %v4916_v8  ;;  %v4932_v22 = vxor.u32 %v4926_v54, %v4920_v17 }
 0x356   :  { %v4935_v24 = vxor.u32 %v4929_v21, %v4923_v52 }
 0x357   :  { %v4927_v63 = vshrl.u32 %v4921_v19, 16  ;;  %v4938_v29 = vmul.u32 2246822507, %v4932_v22 }
 0x358   :  { %v4941_v23 = vmul.u32 2246822507, %v4935_v24 }
 0x359   :  { %v4944_v30 = vshrl.u32 %v4938_v29, 13 }
 0x35a   :  { %v4947_v33 = vshrl.u32 %v4941_v23, 13 }
 0x35b   :  { %v4950_v36 = vxor.u32 %v4944_v30, %v4938_v29 }
 0x35c   :  { %v4953_v38 = vxor.u32 %v4947_v33, %v4941_v23 }
 0x35d   :  { %v4956_v39 = vmul.u32 3266489909, %v4950_v36 }
 0x35e   :  { %v4959_v41 = vmul.u32 3266489909, %v4953_v38 }
 0x35f   :  { %v4962_v6 = vshrl.u32 %v4956_v39, 16 }
 0x360   :  { %v4965_v40 = vshrl.u32 %v4959_v41, 16 }
 0x361   :  { %v4968_v50 = vxor.u32 %v4962_v6, %v4956_v39 }
 0x362   :  { %v4971_v55 = vxor.u32 %v4965_v40, %v4959_v41 }
 0x363   :  { %v4974_v58 = vand.u32 2147483647, %v4968_v50 }
 0x365   :  { %vm4980_vm2 = vcmp.ge.s32.totalorder %v4974_v58, 429496730 }
 0x38d   :  { %v5728_v59 = vpop.f32.mrb[36].mxu1 }
 0x38e   :  { %v5729_v60 = vpop.f32.mrb[37].mxu1 }
 0x38f   :  { %v5730_v62 = vadd.f32 %v5729_v60, %v5728_v59  ;;  %v5731_v0 = vpop.f32.mrb[38].mxu1  ;;  %v2845_v59 = vrot.slane %v7003_v18, %v6933_v45 }
 0x390   :  { %v5732_v1 = vpop.f32.mrb[39].mxu1 }
 0x391   :  { %v4887_v3 = vadd.f32 %v5730_v62, %v4846_v51  ;;  %v5733_v4 = vadd.f32 %v5732_v1, %v5731_v0  ;;  %v4930_v51 = vshrl.u32 %v4924_v20, 16  ;;  %v4977_v62 = vand.u32 2147483647, %v4971_v55 }
 0x393   :  { %v4988_v46 = vmul.f32 1.25, %v4887_v3  ;;  %v4890_v5 = vadd.f32 %v5733_v4, %v4849_v57  ;;  %v4933_v57 = vxor.u32 %v4927_v63, %v4921_v19  ;;  %v4936_v25 = vxor.u32 %v4930_v51, %v4924_v20 }
 0x394   :  { %vm4983_vm4 = vcmp.ge.s32.totalorder %v4977_v62, 429496730 }
 0x395   :  { %v4994_v43 = vsel %vm4982_vm0, %v4988_v46, 0.0  ;;  %v4991_v9 = vmul.f32 1.25, %v4890_v5  ;;  %v4939_v26 = vmul.u32 2246822507, %v4933_v57  ;;  %v4942_v27 = vmul.u32 2246822507, %v4936_v25 }
 0x396   :  { %5000 = vst [vmem:[#allocation13 + $0x10] sm:$0xff] %v4994_v43 }
 0x397   :  { %v4997_v10 = vsel %vm4985_vm1, %v4991_v9, 0.0  ;;  %v4945_v31 = vshrl.u32 %v4939_v26, 13  ;;  %v4948_v35 = vshrl.u32 %v4942_v27, 13 }
 0x398   :  { %5003 = vst [vmem:[#allocation13 + $0x28] sm:$0xff] %v4997_v10 }
 0x399   :  { %v4951_v37 = vxor.u32 %v4945_v31, %v4939_v26  ;;  %v4954_v32 = vxor.u32 %v4948_v35, %v4942_v27 }
 0x39b   :  { %v4957_v28 = vmul.u32 3266489909, %v4951_v37  ;;  %v4960_v42 = vmul.u32 3266489909, %v4954_v32 }
 0x39d   :  { %v4963_v47 = vshrl.u32 %v4957_v28, 16  ;;  %v4966_v48 = vshrl.u32 %v4960_v42, 16 }
 0x39f   :  { %v4969_v53 = vxor.u32 %v4963_v47, %v4957_v28  ;;  %v4972_v49 = vxor.u32 %v4966_v48, %v4960_v42 }
 0x3a1   :  { %v4975_v60 = vand.u32 2147483647, %v4969_v53  ;;  %v4978_v2 = vand.u32 2147483647, %v4972_v49 }
 0x3a3   :  { %vm4981_vm3 = vcmp.ge.s32.totalorder %v4975_v60, 429496730  ;;  %vm4984_vm5 = vcmp.ge.s32.totalorder %v4978_v2, 429496730 }
 0x3cd   :  { %v4638_v61 = vpop.f32.mrb[8].mxu0 }
 0x3ce   :  { %v5758_v0 = vadd.f32 %v4638_v61, %v2841_v56  ;;  %v4640_v1 = vpop.f32.mrb[9].mxu0 }
 0x3cf   :  { %v5759_v3 = vadd.f32 %v4640_v1, %v2845_v59  ;;  %v4642_v4 = vpop.f32.mrb[10].mxu0 }
 0x3d0   :  { %v4986_v46 = vmul.f32 1.25, %v5758_v0  ;;  %v5760_v5 = vadd.f32 %v4642_v4, %v2841_v56  ;;  %v4644_v43 = vpop.f32.mrb[11].mxu0 }
 0x3d1   :  { %v4987_v44 = vmul.f32 1.25, %v5759_v3  ;;  %v5761_v9 = vadd.f32 %v4644_v43, %v2845_v59 }
 0x3d2   :  { %v4992_v10 = vsel %vm4980_vm2, %v4986_v46, 0.0  ;;  %v4989_v45 = vmul.f32 1.25, %v5760_v5 }
 0x3d3   :  { %4998 = vst [vmem:[#allocation13] sm:$0xff] %v4992_v10  ;;  %v4993_v18 = vsel %vm4981_vm3, %v4987_v44, 0.0  ;;  %v4990_v11 = vmul.f32 1.25, %v5761_v9 }
 0x3d4   :  { %4999 = vst [vmem:[#allocation13 + $0x8] sm:$0xff] %v4993_v18  ;;  %v4995_v12 = vsel %vm4983_vm4, %v4989_v45, 0.0 }
 0x3d5   :  { %5001 = vst [vmem:[#allocation13 + $0x18] sm:$0xff] %v4995_v12  ;;  %v4996_v13 = vsel %vm4984_vm5, %v4990_v11, 0.0 }
 0x3d6   :  { %5002 = vst [vmem:[#allocation13 + $0x20] sm:$0xff] %v4996_v13 }
 0x3d7   :  { %6764 = shalt.err (!%p6761_p2)
}
 0x3d8   :  { %s6765_s13 = scalar_lea.hbm %s7036_s6, 768 }
 0x3d9   :  { %p6766_p3 = scmp.ne.s32.totalorder %s7036_s6, %s6765_s13  ;;  %p6769_p4 = scmp.lt.u32.totalorder %s6765_s13, %s7036_s6 }
 0x3db   :  { %p6771_p5 = pnand %p6769_p4, %p6766_p3 }
 0x3dd   :  { %6774 = shalt.err (!%p6771_p5)
}
 0x3de   :  { %s6794_s19 = smov 384   ;;  %s6795_s20 = smov 24  }
 0x3df   :  { %5015 = dma.vmem_to_hbm [thread:$0]  %s5010_s4, 768, %s7036_s6, [#allocation6], %s6794_s19, %s6794_s19, %s6795_s20  }
 0x3e0   :  { %6781 = dma.done.wait [#allocation6], 768  }
 0x3e1   :  { %6782 = vsyncadd [#allocation6], 4294966528 }
 0x3e2   :  { %5019 = vsyncpa [#allocation5], 1 }
 0x3e3   :  { %5020 = vsyncpa [#allocation8], 1 }
 0x3e4   :  { %5021 = vsyncpa [#allocation11], 1 }
 0x3e5   :  { %5022 = vsyncpa [#allocation6], 1 }

</bundles_post_ra>
